<compile_context>
chip_gen: v5e
topology: v5e:2x2
jax: 0.10.0
libtpu: 0.0.40
codegen_flags: <defaults>
</compile_context>

<pallas_src>
import functools
import math

import jax
import jax.numpy as jnp
from jax.experimental import pallas as pl
from jax.experimental.pallas import tpu as pltpu


# ----------------------------- Pallas kernel ------------------------------ #
def _kan_layer(act, bw_ref, sw_ref, jrow_ref, rep_ref, *,
               spline_order, grid_size, inv_h, knot0):
    """One KANLinear forward on a batch tile.

    act      : (bn, in_f) f32 activations
    bw_ref   : (in_f, out_f) bf16          base_weight.T
    sw_ref   : (gk*in_f, out_f) bf16       scaled_spline_weight, row j*in_f + i
    jrow_ref : (1, gk*in_f) f32            block index j per packed column
    rep_ref  : (in_f, gk*in_f) f32 0/1 replication matrix, or None if in_f % 128 == 0
    """
    f32, bf16 = jnp.float32, jnp.bfloat16
    so = spline_order
    gk = grid_size + so

    # ---- base branch: silu(x) @ base_weight.T (bf16 MXU operands, f32 accumulation).
    base_out = jnp.dot((act * jax.nn.sigmoid(act)).astype(bf16), bw_ref[...],
                       preferred_element_type=f32)

    # ---- knot-index coordinate on the narrow tile: t = (x - knot0) / h.
    t = (act - knot0) * inv_h                                    # (bn, in_f) f32

    # ---- replicate t across the gk basis blocks (packed column j*in_f + i).
    if rep_ref is None:
        # in_f multiple of 128: pure lane-aligned vreg copies, no MXU / extra input.
        t_rep = jnp.concatenate([t] * gk, axis=1)
    else:
        # small in_f: exact 0/1 pass-through matmul; HIGHEST keeps t bit-accurate so
        # the knot-interval tests below are not perturbed by bf16 rounding.
        t_rep = jnp.dot(t, rep_ref[...], preferred_element_type=f32,
                        precision=jax.lax.Precision.HIGHEST)
    u0 = t_rep - jrow_ref[...]          # u0[:, j*in_f + i] = t[:, i] - j

    # ---- order-0 bases for the spline_order+1 shifted copies:
    #      copy c, block j  <->  order-0 basis (j + c);  B0 = 1{c <= u0 < c+1}.
    copies = [((u0 >= c) & (u0 < c + 1)).astype(f32) for c in range(so + 1)]

    # ---- Cox-de Boor on the uniform grid, pure element-wise (no divides, no shifts):
    #      B^k_{j+c} = ((u0 - c) * B^{k-1}_{j+c} + ((k+1+c) - u0) * B^{k-1}_{j+c+1}) / k
    for k in range(1, so + 1):
        inv_k = 1.0 / k
        copies = [
            ((u0 - c if c else u0) * copies[c]
             + ((k + 1 + c) - u0) * copies[c + 1]) * inv_k
            for c in range(so + 1 - k)
        ]
    bases = copies[0]                   # (bn, gk*in_f): exactly the gk final bases

    # ---- spline branch: ONE MXU matmul with K = gk*in_f (bf16 operands, f32 acc).
    spline_out = jnp.dot(bases.astype(bf16), sw_ref[...],
                         preferred_element_type=f32)
    return base_out + spline_out


def kan_stack_kernel(*refs, num_layers, spline_order, grid_size, inv_h, knot0,
                     use_rep):
    """Fused forward of the whole KANLinear stack on one batch tile."""
    x_ref, o_ref = refs[0], refs[-1]
    w_refs = refs[1:-1]
    act = x_ref[...]
    pos = 0
    for l in range(num_layers):
        bw_ref, sw_ref, jrow_ref = w_refs[pos:pos + 3]
        pos += 3
        rep_ref = None
        if use_rep[l]:
            rep_ref = w_refs[pos]
            pos += 1
        act = _kan_layer(act, bw_ref, sw_ref, jrow_ref, rep_ref,
                         spline_order=spline_order, grid_size=grid_size,
                         inv_h=inv_h, knot0=knot0)
    o_ref[...] = act


def basic_kan_forward_pallas(x, layers, *, grid_size, spline_order,
                             grid_range=(-1.0, 1.0), batch_block=512):
    n, in_f0 = x.shape
    so = spline_order
    h = (grid_range[1] - grid_range[0]) / grid_size
    inv_h = 1.0 / h
    knot0 = grid_range[0] - so * h
    num_layers = len(layers)

    # ---- batch tiling: multiples of 8; 512-row tiles for large batches, and for
    #      small batches split so the grid always has >= 2 steps (v7x 2-TC sharding
    #      of the "parallel" axis + real pipeline steps).
    n8 = max(8, ((n + 7) // 8) * 8)
    bn = max(8, (min(int(batch_block), n8) // 8) * 8)
    if bn >= n8 and n8 >= 16:
        bn = max(8, ((n8 // 2 + 7) // 8) * 8)
    n_pad = pl.cdiv(n, bn) * bn
    xp = x if n_pad == n else jnp.pad(x, ((0, n_pad - n), (0, 0)))

    # ---- pad the FINAL layer's out_features to a multiple of 128 so the output
    #      store is an unmasked full-lane vst; the padding is sliced off below.
    out_f = layers[-1]["base_w_t"].shape[1]
    out_fp = ((out_f + 127) // 128) * 128

    inputs = [xp]
    in_specs = [pl.BlockSpec((bn, in_f0), lambda i: (i, 0))]
    use_rep = []
    for li, p in enumerate(layers):
        in_f, o_f = p["base_w_t"].shape
        bw, sw = p["base_w_t"], p["spline_w_flat"]
        if li == num_layers - 1 and out_fp != o_f:
            bw = jnp.pad(bw, ((0, 0), (0, out_fp - o_f)))
            sw = jnp.pad(sw, ((0, 0), (0, out_fp - o_f)))
        # bf16 MXU operands (kernel accumulates in f32): ~3x MXU throughput vs f32
        # HIGHEST and half the resident weight bytes.
        layer_arrays = [bw.astype(jnp.bfloat16), sw.astype(jnp.bfloat16), p["j_row"]]
        rep_needed = (in_f % 128) != 0
        use_rep.append(rep_needed)
        if rep_needed:               # small in_f: keep the exact 0/1 replication matmul
            layer_arrays.append(p["rep"])
        for a in layer_arrays:
            inputs.append(a)
            # full-array block + constant index map => fetched once, resident in VMEM.
            in_specs.append(pl.BlockSpec(a.shape, lambda i: (0, 0)))

    kernel = functools.partial(
        kan_stack_kernel, num_layers=num_layers, spline_order=spline_order,
        grid_size=grid_size, inv_h=inv_h, knot0=knot0, use_rep=tuple(use_rep))

    # explicit VMEM budget with headroom (v7x only has 64 MiB per TensorCore).
    try:
        vmem_cap = int(pltpu.get_tpu_info().vmem_capacity_bytes)
    except Exception:
        vmem_cap = 64 * 1024 * 1024
    vmem_limit = min(48 * 1024 * 1024, (vmem_cap * 3) // 4)

    # TODO(synk): at production widths on v7x the full weight stack may not fit
    # resident in 64 MiB VMEM: single-buffer the constant-index weight specs
    # (pipeline_mode=pl.Buffered(1)) and/or split the stack into layer groups per
    # pallas_call (or keep later-layer weights in pl.ANY and prefetch manually).
    out = pl.pallas_call(
        kernel,
        out_shape=jax.ShapeDtypeStruct((n_pad, out_fp), jnp.float32),
        grid=(n_pad // bn,),
        in_specs=in_specs,
        out_specs=pl.BlockSpec((bn, out_fp), lambda i: (i, 0)),
        compiler_params=pltpu.CompilerParams(
            dimension_semantics=("parallel",),     # v7x: shard batch tiles over 2 TCs
            vmem_limit_bytes=vmem_limit),
    )(*inputs)
    return out[:n, :out_f]


# --------------------------- parameter creation ---------------------------- #
def init_kan_layer(key, in_f, out_f, grid_size, spline_order,
                   grid_range=(-1.0, 1.0)):
    """Deterministic synthetic init matching KANLinear parameter shapes."""
    k1, k2, k3 = jax.random.split(key, 3)
    so = spline_order
    h = (grid_range[1] - grid_range[0]) / grid_size
    gk = grid_size + so                          # number of final B-spline bases

    # Uniform knot vector (== torch `grid` row), length grid_size + 2*so + 1.
    knots = jnp.arange(-so, grid_size + so + 1, dtype=jnp.float32) * h + grid_range[0]
    grid_t = jnp.tile(knots[:, None], (1, in_f))                          # (W, in)

    bound = math.sqrt(6.0 / in_f)  # kaiming-uniform-like bound
    base_weight = jax.random.uniform(k1, (out_f, in_f), jnp.float32, -bound, bound)
    # TODO(synk): torch's init runs curve2coeff (torch.linalg.lstsq on noise); a plain
    # deterministic uniform init is used instead (forward-pass math is unaffected).
    spline_weight = jax.random.uniform(k2, (out_f, in_f, gk), jnp.float32, -0.1, 0.1)
    spline_scaler = jax.random.uniform(k3, (out_f, in_f), jnp.float32, -bound, bound)

    scaled = spline_weight * spline_scaler[:, :, None]                    # (out, in, gk)
    spline_w_t = jnp.transpose(scaled, (2, 1, 0))                         # (gk, in, out)
    spline_w_flat = spline_w_t.reshape(gk * in_f, out_f)                  # row j*in_f+i
    base_w_t = base_weight.T                                              # (in, out)

    # 0/1 replication matrix: (t @ rep)[:, j*in_f + i] = t[:, i]
    rep = jnp.tile(jnp.eye(in_f, dtype=jnp.float32), (1, gk))             # (in, gk*in)
    # block index per packed column: j_row[0, j*in_f + i] = j
    j_row = jnp.repeat(jnp.arange(gk, dtype=jnp.float32), in_f)[None, :]  # (1, gk*in)

    return {"grid_t": grid_t, "base_w_t": base_w_t, "spline_w_t": spline_w_t,
            "spline_w_flat": spline_w_flat, "rep": rep, "j_row": j_row}


class BasicKANPallas:
    """JAX/Pallas equivalent of Basic_KAN: a chain of KANLinear layers (fused)."""

    def __init__(self, input_shape, hidden_sizes, size, key,
                 grid_range=(-1.0, 1.0), batch_block=512):
        self.spline_order = size["spline_order"]
        self.grid_size = size["grid_size"]
        self.grid_range = grid_range
        self.batch_block = batch_block
        self.layers = []
        in_f = input_shape[0]
        for hsz in hidden_sizes:
            key, sub = jax.random.split(key)
            self.layers.append(
                init_kan_layer(sub, in_f, hsz, self.grid_size, self.spline_order,
                               grid_range))
            in_f = hsz
        self.output_shapes = {"state": (hidden_sizes[-1],)}

    def __call__(self, observations):
        x = jnp.asarray(observations, jnp.float32)
        out = basic_kan_forward_pallas(
            x, self.layers,
            grid_size=self.grid_size, spline_order=self.spline_order,
            grid_range=self.grid_range, batch_block=self.batch_block)
        return {"state": out}


# ------------------------- pure-JAX reference ------------------------------ #
def kan_linear_ref(x, grid_t, base_w_t, spline_w_t, spline_order, mxu_dtype=None):
    hp = jax.lax.Precision.HIGHEST
    silu = x * jax.nn.sigmoid(x)
    grid = grid_t.T                                   # (in, W)
    xb = x[:, :, None]                                # (N, in, 1)
    # NOTE: strict `x < hi` means inputs at/above the top knot get a zero spline
    # contribution — this matches the torch reference behavior.
    bases = ((xb >= grid[None, :, :-1]) & (xb < grid[None, :, 1:])).astype(x.dtype)
    for k in range(1, spline_order + 1):
        bases = ((xb - grid[None, :, :-(k + 1)])
                 / (grid[None, :, k:-1] - grid[None, :, :-(k + 1)]) * bases[:, :, :-1]
                 + (grid[None, :, k + 1:] - xb)
                 / (grid[None, :, k + 1:] - grid[None, :, 1:-k]) * bases[:, :, 1:])
    if mxu_dtype is None:
        base_out = jnp.dot(silu, base_w_t, precision=hp)
        spline_out = jnp.einsum("nig,gio->no", bases, spline_w_t, precision=hp)
    else:  # matched-precision reference (same bf16 operand rounding as the kernel)
        base_out = jnp.dot(silu.astype(mxu_dtype), base_w_t.astype(mxu_dtype),
                           preferred_element_type=jnp.float32)
        spline_out = jnp.einsum("nig,gio->no", bases.astype(mxu_dtype),
                                spline_w_t.astype(mxu_dtype),
                                preferred_element_type=jnp.float32)
    return base_out + spline_out


def basic_kan_ref(model, observations, mxu_dtype=None):
    x = jnp.asarray(observations, jnp.float32)
    for p in model.layers:
        x = kan_linear_ref(x, p["grid_t"], p["base_w_t"], p["spline_w_t"],
                           model.spline_order, mxu_dtype=mxu_dtype)
    return {"state": x}


# --------------------------------- main ------------------------------------ #
if __name__ == "__main__":
    key = jax.random.PRNGKey(0)
    k_obs, k_params = jax.random.split(key)

    batch, input_dim = 64, 16
    hidden_sizes = [32, 32]
    size = {"grid_size": 5, "spline_order": 3}

    obs = jax.random.uniform(k_obs, (batch, input_dim), jnp.float32, -1.0, 1.0)

    model = BasicKANPallas((input_dim,), hidden_sizes, size, k_params)

    out = model(obs)
    state = jax.block_until_ready(out["state"])
    assert state.shape == (batch, hidden_sizes[-1])

    # (1) tight check vs a reference using the SAME bf16 MXU operand rounding:
    #     verifies the uniform-grid Cox-de Boor reformulation / packing exactly.
    ref_bf = basic_kan_ref(model, obs, mxu_dtype=jnp.bfloat16)["state"]
    err_bf = float(jnp.max(jnp.abs(state - ref_bf)))
    assert jnp.allclose(state, ref_bf, atol=1e-2, rtol=1e-2), (
        f"matched-precision mismatch, max abs err = {err_bf}")

    # (2) looser check vs the full-f32 torch-semantics reference: bounds the drift
    #     introduced by bf16 MXU operands (f32 accumulation) over the 2-layer stack.
    ref_32 = basic_kan_ref(model, obs)["state"]
    err_32 = float(jnp.max(jnp.abs(state - ref_32)))
    assert jnp.allclose(state, ref_32, atol=1e-1, rtol=1e-1), (
        f"f32 reference mismatch, max abs err = {err_32}")

    print("KERNEL_OK")
</pallas_src>

<mosaic_0001>
module attributes {stable_mosaic.version = 11 : i64} {
  func.func @kan_stack_kernel(%arg0: i32, %arg1: memref<32x16xf32, #tpu.memory_space<vmem>>, %arg2: memref<16x32xbf16, #tpu.memory_space<vmem>>, %arg3: memref<128x32xbf16, #tpu.memory_space<vmem>>, %arg4: memref<1x128xf32, #tpu.memory_space<vmem>>, %arg5: memref<16x128xf32, #tpu.memory_space<vmem>>, %arg6: memref<32x128xbf16, #tpu.memory_space<vmem>>, %arg7: memref<256x128xbf16, #tpu.memory_space<vmem>>, %arg8: memref<1x256xf32, #tpu.memory_space<vmem>>, %arg9: memref<32x256xf32, #tpu.memory_space<vmem>>, %arg10: memref<32x128xf32, #tpu.memory_space<vmem>>) attributes {dimension_semantics = [#tpu.dimension_semantics<parallel>], iteration_bounds = array<i64: 2>, scalar_prefetch = 0 : i64, scratch_operands = 0 : i64, tpu.core_type = #tpu.core_type<tc>, window_params = [{transform_indices = @transform_0, window_bounds = array<i64: 32, 16>}, {pipeline_mode = #tpu.pipeline_mode<synchronous>, transform_indices = @transform_1, window_bounds = array<i64: 16, 32>}, {pipeline_mode = #tpu.pipeline_mode<synchronous>, transform_indices = @transform_2, window_bounds = array<i64: 128, 32>}, {pipeline_mode = #tpu.pipeline_mode<synchronous>, transform_indices = @transform_3, window_bounds = array<i64: 1, 128>}, {pipeline_mode = #tpu.pipeline_mode<synchronous>, transform_indices = @transform_4, window_bounds = array<i64: 16, 128>}, {pipeline_mode = #tpu.pipeline_mode<synchronous>, transform_indices = @transform_5, window_bounds = array<i64: 32, 128>}, {pipeline_mode = #tpu.pipeline_mode<synchronous>, transform_indices = @transform_6, window_bounds = array<i64: 256, 128>}, {pipeline_mode = #tpu.pipeline_mode<synchronous>, transform_indices = @transform_7, window_bounds = array<i64: 1, 256>}, {pipeline_mode = #tpu.pipeline_mode<synchronous>, transform_indices = @transform_8, window_bounds = array<i64: 32, 256>}, {transform_indices = @transform_9, window_bounds = array<i64: 32, 128>}]} {
    %c0 = arith.constant 0 : index
    %c0_0 = arith.constant 0 : index
    %0 = vector.load %arg1[%c0, %c0_0] : memref<32x16xf32, #tpu.memory_space<vmem>>, vector<32x16xf32>
    %1 = arith.negf %0 : vector<32x16xf32>
    %2 = math.exp %1 : vector<32x16xf32>
    %cst = arith.constant 1.000000e+00 : f32
    %3 = vector.broadcast %cst : f32 to vector<32x16xf32>
    %4 = arith.addf %3, %2 : vector<32x16xf32>
    %5 = arith.divf %3, %4 : vector<32x16xf32>
    %6 = arith.mulf %0, %5 : vector<32x16xf32>
    %7 = arith.truncf %6 : vector<32x16xf32> to vector<32x16xbf16>
    %c0_1 = arith.constant 0 : index
    %c0_2 = arith.constant 0 : index
    %8 = vector.load %arg2[%c0_1, %c0_2] : memref<16x32xbf16, #tpu.memory_space<vmem>>, vector<16x32xbf16>
    %cst_3 = arith.constant dense<0.000000e+00> : vector<32x32xf32>
    %9 = tpu.matmul %7, %8, %cst_3 {dimension_numbers = #tpu.dot_dimension_numbers<[1], [0], [0], [1], [0, 0, 1, 1], [], []>} : vector<32x16xbf16>, vector<16x32xbf16>, vector<32x32xf32> -> vector<32x32xf32>
    %cst_4 = arith.constant -2.200000e+00 : f32
    %10 = vector.broadcast %cst_4 : f32 to vector<32x16xf32>
    %11 = arith.subf %0, %10 : vector<32x16xf32>
    %cst_5 = arith.constant 2.500000e+00 : f32
    %12 = vector.broadcast %cst_5 : f32 to vector<32x16xf32>
    %13 = arith.mulf %11, %12 : vector<32x16xf32>
    %c0_6 = arith.constant 0 : index
    %c0_7 = arith.constant 0 : index
    %14 = vector.load %arg5[%c0_6, %c0_7] : memref<16x128xf32, #tpu.memory_space<vmem>>, vector<16x128xf32>
    %cst_8 = arith.constant dense<0.000000e+00> : vector<32x128xf32>
    %15 = tpu.matmul %13, %14, %cst_8 {dimension_numbers = #tpu.dot_dimension_numbers<[1], [0], [0], [1], [0, 0, 1, 1], [], []>, precision = #tpu.contract_precision<fp32>} : vector<32x16xf32>, vector<16x128xf32>, vector<32x128xf32> -> vector<32x128xf32>
    %c0_9 = arith.constant 0 : index
    %c0_10 = arith.constant 0 : index
    %16 = vector.load %arg4[%c0_9, %c0_10] : memref<1x128xf32, #tpu.memory_space<vmem>>, vector<1x128xf32>
    %17 = vector.broadcast %16 : vector<1x128xf32> to vector<32x128xf32>
    %18 = arith.subf %15, %17 : vector<32x128xf32>
    %cst_11 = arith.constant 0.000000e+00 : f32
    %19 = vector.broadcast %cst_11 : f32 to vector<32x128xf32>
    %20 = arith.cmpf oge, %18, %19 : vector<32x128xf32>
    %cst_12 = arith.constant 1.000000e+00 : f32
    %21 = vector.broadcast %cst_12 : f32 to vector<32x128xf32>
    %22 = arith.cmpf olt, %18, %21 : vector<32x128xf32>
    %23 = arith.andi %20, %22 : vector<32x128xi1>
    %24 = arith.extui %23 : vector<32x128xi1> to vector<32x128xi32>
    %25 = arith.sitofp %24 : vector<32x128xi32> to vector<32x128xf32>
    %cst_13 = arith.constant 1.000000e+00 : f32
    %26 = vector.broadcast %cst_13 : f32 to vector<32x128xf32>
    %27 = arith.cmpf oge, %18, %26 : vector<32x128xf32>
    %cst_14 = arith.constant 2.000000e+00 : f32
    %28 = vector.broadcast %cst_14 : f32 to vector<32x128xf32>
    %29 = arith.cmpf olt, %18, %28 : vector<32x128xf32>
    %30 = arith.andi %27, %29 : vector<32x128xi1>
    %31 = arith.extui %30 : vector<32x128xi1> to vector<32x128xi32>
    %32 = arith.sitofp %31 : vector<32x128xi32> to vector<32x128xf32>
    %cst_15 = arith.constant 2.000000e+00 : f32
    %33 = vector.broadcast %cst_15 : f32 to vector<32x128xf32>
    %34 = arith.cmpf oge, %18, %33 : vector<32x128xf32>
    %cst_16 = arith.constant 3.000000e+00 : f32
    %35 = vector.broadcast %cst_16 : f32 to vector<32x128xf32>
    %36 = arith.cmpf olt, %18, %35 : vector<32x128xf32>
    %37 = arith.andi %34, %36 : vector<32x128xi1>
    %38 = arith.extui %37 : vector<32x128xi1> to vector<32x128xi32>
    %39 = arith.sitofp %38 : vector<32x128xi32> to vector<32x128xf32>
    %cst_17 = arith.constant 3.000000e+00 : f32
    %40 = vector.broadcast %cst_17 : f32 to vector<32x128xf32>
    %41 = arith.cmpf oge, %18, %40 : vector<32x128xf32>
    %cst_18 = arith.constant 4.000000e+00 : f32
    %42 = vector.broadcast %cst_18 : f32 to vector<32x128xf32>
    %43 = arith.cmpf olt, %18, %42 : vector<32x128xf32>
    %44 = arith.andi %41, %43 : vector<32x128xi1>
    %45 = arith.extui %44 : vector<32x128xi1> to vector<32x128xi32>
    %46 = arith.sitofp %45 : vector<32x128xi32> to vector<32x128xf32>
    %47 = arith.mulf %18, %25 : vector<32x128xf32>
    %cst_19 = arith.constant 2.000000e+00 : f32
    %48 = vector.broadcast %cst_19 : f32 to vector<32x128xf32>
    %49 = arith.subf %48, %18 : vector<32x128xf32>
    %50 = arith.mulf %49, %32 : vector<32x128xf32>
    %51 = arith.addf %47, %50 : vector<32x128xf32>
    %cst_20 = arith.constant 1.000000e+00 : f32
    %52 = vector.broadcast %cst_20 : f32 to vector<32x128xf32>
    %53 = arith.mulf %51, %52 : vector<32x128xf32>
    %cst_21 = arith.constant 1.000000e+00 : f32
    %54 = vector.broadcast %cst_21 : f32 to vector<32x128xf32>
    %55 = arith.subf %18, %54 : vector<32x128xf32>
    %56 = arith.mulf %55, %32 : vector<32x128xf32>
    %cst_22 = arith.constant 3.000000e+00 : f32
    %57 = vector.broadcast %cst_22 : f32 to vector<32x128xf32>
    %58 = arith.subf %57, %18 : vector<32x128xf32>
    %59 = arith.mulf %58, %39 : vector<32x128xf32>
    %60 = arith.addf %56, %59 : vector<32x128xf32>
    %cst_23 = arith.constant 1.000000e+00 : f32
    %61 = vector.broadcast %cst_23 : f32 to vector<32x128xf32>
    %62 = arith.mulf %60, %61 : vector<32x128xf32>
    %cst_24 = arith.constant 2.000000e+00 : f32
    %63 = vector.broadcast %cst_24 : f32 to vector<32x128xf32>
    %64 = arith.subf %18, %63 : vector<32x128xf32>
    %65 = arith.mulf %64, %39 : vector<32x128xf32>
    %cst_25 = arith.constant 4.000000e+00 : f32
    %66 = vector.broadcast %cst_25 : f32 to vector<32x128xf32>
    %67 = arith.subf %66, %18 : vector<32x128xf32>
    %68 = arith.mulf %67, %46 : vector<32x128xf32>
    %69 = arith.addf %65, %68 : vector<32x128xf32>
    %cst_26 = arith.constant 1.000000e+00 : f32
    %70 = vector.broadcast %cst_26 : f32 to vector<32x128xf32>
    %71 = arith.mulf %69, %70 : vector<32x128xf32>
    %72 = arith.mulf %18, %53 : vector<32x128xf32>
    %cst_27 = arith.constant 3.000000e+00 : f32
    %73 = vector.broadcast %cst_27 : f32 to vector<32x128xf32>
    %74 = arith.subf %73, %18 : vector<32x128xf32>
    %75 = arith.mulf %74, %62 : vector<32x128xf32>
    %76 = arith.addf %72, %75 : vector<32x128xf32>
    %cst_28 = arith.constant 5.000000e-01 : f32
    %77 = vector.broadcast %cst_28 : f32 to vector<32x128xf32>
    %78 = arith.mulf %76, %77 : vector<32x128xf32>
    %cst_29 = arith.constant 1.000000e+00 : f32
    %79 = vector.broadcast %cst_29 : f32 to vector<32x128xf32>
    %80 = arith.subf %18, %79 : vector<32x128xf32>
    %81 = arith.mulf %80, %62 : vector<32x128xf32>
    %cst_30 = arith.constant 4.000000e+00 : f32
    %82 = vector.broadcast %cst_30 : f32 to vector<32x128xf32>
    %83 = arith.subf %82, %18 : vector<32x128xf32>
    %84 = arith.mulf %83, %71 : vector<32x128xf32>
    %85 = arith.addf %81, %84 : vector<32x128xf32>
    %cst_31 = arith.constant 5.000000e-01 : f32
    %86 = vector.broadcast %cst_31 : f32 to vector<32x128xf32>
    %87 = arith.mulf %85, %86 : vector<32x128xf32>
    %88 = arith.mulf %18, %78 : vector<32x128xf32>
    %cst_32 = arith.constant 4.000000e+00 : f32
    %89 = vector.broadcast %cst_32 : f32 to vector<32x128xf32>
    %90 = arith.subf %89, %18 : vector<32x128xf32>
    %91 = arith.mulf %90, %87 : vector<32x128xf32>
    %92 = arith.addf %88, %91 : vector<32x128xf32>
    %cst_33 = arith.constant 0.333333343 : f32
    %93 = vector.broadcast %cst_33 : f32 to vector<32x128xf32>
    %94 = arith.mulf %92, %93 : vector<32x128xf32>
    %95 = arith.truncf %94 : vector<32x128xf32> to vector<32x128xbf16>
    %c0_34 = arith.constant 0 : index
    %c0_35 = arith.constant 0 : index
    %96 = vector.load %arg3[%c0_34, %c0_35] : memref<128x32xbf16, #tpu.memory_space<vmem>>, vector<128x32xbf16>
    %cst_36 = arith.constant dense<0.000000e+00> : vector<32x32xf32>
    %97 = tpu.matmul %95, %96, %cst_36 {dimension_numbers = #tpu.dot_dimension_numbers<[1], [0], [0], [1], [0, 0, 1, 1], [], []>} : vector<32x128xbf16>, vector<128x32xbf16>, vector<32x32xf32> -> vector<32x32xf32>
    %98 = arith.addf %9, %97 : vector<32x32xf32>
    %99 = arith.negf %98 : vector<32x32xf32>
    %100 = math.exp %99 : vector<32x32xf32>
    %cst_37 = arith.constant 1.000000e+00 : f32
    %101 = vector.broadcast %cst_37 : f32 to vector<32x32xf32>
    %102 = arith.addf %101, %100 : vector<32x32xf32>
    %103 = arith.divf %101, %102 : vector<32x32xf32>
    %104 = arith.mulf %98, %103 : vector<32x32xf32>
    %105 = arith.truncf %104 : vector<32x32xf32> to vector<32x32xbf16>
    %c0_38 = arith.constant 0 : index
    %c0_39 = arith.constant 0 : index
    %106 = vector.load %arg6[%c0_38, %c0_39] : memref<32x128xbf16, #tpu.memory_space<vmem>>, vector<32x128xbf16>
    %cst_40 = arith.constant dense<0.000000e+00> : vector<32x128xf32>
    %107 = tpu.matmul %105, %106, %cst_40 {dimension_numbers = #tpu.dot_dimension_numbers<[1], [0], [0], [1], [0, 0, 1, 1], [], []>} : vector<32x32xbf16>, vector<32x128xbf16>, vector<32x128xf32> -> vector<32x128xf32>
    %cst_41 = arith.constant -2.200000e+00 : f32
    %108 = vector.broadcast %cst_41 : f32 to vector<32x32xf32>
    %109 = arith.subf %98, %108 : vector<32x32xf32>
    %cst_42 = arith.constant 2.500000e+00 : f32
    %110 = vector.broadcast %cst_42 : f32 to vector<32x32xf32>
    %111 = arith.mulf %109, %110 : vector<32x32xf32>
    %c0_43 = arith.constant 0 : index
    %c0_44 = arith.constant 0 : index
    %112 = vector.load %arg9[%c0_43, %c0_44] : memref<32x256xf32, #tpu.memory_space<vmem>>, vector<32x256xf32>
    %cst_45 = arith.constant dense<0.000000e+00> : vector<32x256xf32>
    %113 = tpu.matmul %111, %112, %cst_45 {dimension_numbers = #tpu.dot_dimension_numbers<[1], [0], [0], [1], [0, 0, 1, 1], [], []>, precision = #tpu.contract_precision<fp32>} : vector<32x32xf32>, vector<32x256xf32>, vector<32x256xf32> -> vector<32x256xf32>
    %c0_46 = arith.constant 0 : index
    %c0_47 = arith.constant 0 : index
    %114 = vector.load %arg8[%c0_46, %c0_47] : memref<1x256xf32, #tpu.memory_space<vmem>>, vector<1x256xf32>
    %115 = vector.broadcast %114 : vector<1x256xf32> to vector<32x256xf32>
    %116 = arith.subf %113, %115 : vector<32x256xf32>
    %cst_48 = arith.constant 0.000000e+00 : f32
    %117 = vector.broadcast %cst_48 : f32 to vector<32x256xf32>
    %118 = arith.cmpf oge, %116, %117 : vector<32x256xf32>
    %cst_49 = arith.constant 1.000000e+00 : f32
    %119 = vector.broadcast %cst_49 : f32 to vector<32x256xf32>
    %120 = arith.cmpf olt, %116, %119 : vector<32x256xf32>
    %121 = arith.andi %118, %120 : vector<32x256xi1>
    %122 = arith.extui %121 : vector<32x256xi1> to vector<32x256xi32>
    %123 = arith.sitofp %122 : vector<32x256xi32> to vector<32x256xf32>
    %cst_50 = arith.constant 1.000000e+00 : f32
    %124 = vector.broadcast %cst_50 : f32 to vector<32x256xf32>
    %125 = arith.cmpf oge, %116, %124 : vector<32x256xf32>
    %cst_51 = arith.constant 2.000000e+00 : f32
    %126 = vector.broadcast %cst_51 : f32 to vector<32x256xf32>
    %127 = arith.cmpf olt, %116, %126 : vector<32x256xf32>
    %128 = arith.andi %125, %127 : vector<32x256xi1>
    %129 = arith.extui %128 : vector<32x256xi1> to vector<32x256xi32>
    %130 = arith.sitofp %129 : vector<32x256xi32> to vector<32x256xf32>
    %cst_52 = arith.constant 2.000000e+00 : f32
    %131 = vector.broadcast %cst_52 : f32 to vector<32x256xf32>
    %132 = arith.cmpf oge, %116, %131 : vector<32x256xf32>
    %cst_53 = arith.constant 3.000000e+00 : f32
    %133 = vector.broadcast %cst_53 : f32 to vector<32x256xf32>
    %134 = arith.cmpf olt, %116, %133 : vector<32x256xf32>
    %135 = arith.andi %132, %134 : vector<32x256xi1>
    %136 = arith.extui %135 : vector<32x256xi1> to vector<32x256xi32>
    %137 = arith.sitofp %136 : vector<32x256xi32> to vector<32x256xf32>
    %cst_54 = arith.constant 3.000000e+00 : f32
    %138 = vector.broadcast %cst_54 : f32 to vector<32x256xf32>
    %139 = arith.cmpf oge, %116, %138 : vector<32x256xf32>
    %cst_55 = arith.constant 4.000000e+00 : f32
    %140 = vector.broadcast %cst_55 : f32 to vector<32x256xf32>
    %141 = arith.cmpf olt, %116, %140 : vector<32x256xf32>
    %142 = arith.andi %139, %141 : vector<32x256xi1>
    %143 = arith.extui %142 : vector<32x256xi1> to vector<32x256xi32>
    %144 = arith.sitofp %143 : vector<32x256xi32> to vector<32x256xf32>
    %145 = arith.mulf %116, %123 : vector<32x256xf32>
    %cst_56 = arith.constant 2.000000e+00 : f32
    %146 = vector.broadcast %cst_56 : f32 to vector<32x256xf32>
    %147 = arith.subf %146, %116 : vector<32x256xf32>
    %148 = arith.mulf %147, %130 : vector<32x256xf32>
    %149 = arith.addf %145, %148 : vector<32x256xf32>
    %cst_57 = arith.constant 1.000000e+00 : f32
    %150 = vector.broadcast %cst_57 : f32 to vector<32x256xf32>
    %151 = arith.mulf %149, %150 : vector<32x256xf32>
    %cst_58 = arith.constant 1.000000e+00 : f32
    %152 = vector.broadcast %cst_58 : f32 to vector<32x256xf32>
    %153 = arith.subf %116, %152 : vector<32x256xf32>
    %154 = arith.mulf %153, %130 : vector<32x256xf32>
    %cst_59 = arith.constant 3.000000e+00 : f32
    %155 = vector.broadcast %cst_59 : f32 to vector<32x256xf32>
    %156 = arith.subf %155, %116 : vector<32x256xf32>
    %157 = arith.mulf %156, %137 : vector<32x256xf32>
    %158 = arith.addf %154, %157 : vector<32x256xf32>
    %cst_60 = arith.constant 1.000000e+00 : f32
    %159 = vector.broadcast %cst_60 : f32 to vector<32x256xf32>
    %160 = arith.mulf %158, %159 : vector<32x256xf32>
    %cst_61 = arith.constant 2.000000e+00 : f32
    %161 = vector.broadcast %cst_61 : f32 to vector<32x256xf32>
    %162 = arith.subf %116, %161 : vector<32x256xf32>
    %163 = arith.mulf %162, %137 : vector<32x256xf32>
    %cst_62 = arith.constant 4.000000e+00 : f32
    %164 = vector.broadcast %cst_62 : f32 to vector<32x256xf32>
    %165 = arith.subf %164, %116 : vector<32x256xf32>
    %166 = arith.mulf %165, %144 : vector<32x256xf32>
    %167 = arith.addf %163, %166 : vector<32x256xf32>
    %cst_63 = arith.constant 1.000000e+00 : f32
    %168 = vector.broadcast %cst_63 : f32 to vector<32x256xf32>
    %169 = arith.mulf %167, %168 : vector<32x256xf32>
    %170 = arith.mulf %116, %151 : vector<32x256xf32>
    %cst_64 = arith.constant 3.000000e+00 : f32
    %171 = vector.broadcast %cst_64 : f32 to vector<32x256xf32>
    %172 = arith.subf %171, %116 : vector<32x256xf32>
    %173 = arith.mulf %172, %160 : vector<32x256xf32>
    %174 = arith.addf %170, %173 : vector<32x256xf32>
    %cst_65 = arith.constant 5.000000e-01 : f32
    %175 = vector.broadcast %cst_65 : f32 to vector<32x256xf32>
    %176 = arith.mulf %174, %175 : vector<32x256xf32>
    %cst_66 = arith.constant 1.000000e+00 : f32
    %177 = vector.broadcast %cst_66 : f32 to vector<32x256xf32>
    %178 = arith.subf %116, %177 : vector<32x256xf32>
    %179 = arith.mulf %178, %160 : vector<32x256xf32>
    %cst_67 = arith.constant 4.000000e+00 : f32
    %180 = vector.broadcast %cst_67 : f32 to vector<32x256xf32>
    %181 = arith.subf %180, %116 : vector<32x256xf32>
    %182 = arith.mulf %181, %169 : vector<32x256xf32>
    %183 = arith.addf %179, %182 : vector<32x256xf32>
    %cst_68 = arith.constant 5.000000e-01 : f32
    %184 = vector.broadcast %cst_68 : f32 to vector<32x256xf32>
    %185 = arith.mulf %183, %184 : vector<32x256xf32>
    %186 = arith.mulf %116, %176 : vector<32x256xf32>
    %cst_69 = arith.constant 4.000000e+00 : f32
    %187 = vector.broadcast %cst_69 : f32 to vector<32x256xf32>
    %188 = arith.subf %187, %116 : vector<32x256xf32>
    %189 = arith.mulf %188, %185 : vector<32x256xf32>
    %190 = arith.addf %186, %189 : vector<32x256xf32>
    %cst_70 = arith.constant 0.333333343 : f32
    %191 = vector.broadcast %cst_70 : f32 to vector<32x256xf32>
    %192 = arith.mulf %190, %191 : vector<32x256xf32>
    %193 = arith.truncf %192 : vector<32x256xf32> to vector<32x256xbf16>
    %c0_71 = arith.constant 0 : index
    %c0_72 = arith.constant 0 : index
    %194 = vector.load %arg7[%c0_71, %c0_72] : memref<256x128xbf16, #tpu.memory_space<vmem>>, vector<256x128xbf16>
    %cst_73 = arith.constant dense<0.000000e+00> : vector<32x128xf32>
    %195 = tpu.matmul %193, %194, %cst_73 {dimension_numbers = #tpu.dot_dimension_numbers<[1], [0], [0], [1], [0, 0, 1, 1], [], []>} : vector<32x256xbf16>, vector<256x128xbf16>, vector<32x128xf32> -> vector<32x128xf32>
    %196 = arith.addf %107, %195 : vector<32x128xf32>
    %c0_74 = arith.constant 0 : index
    %c0_75 = arith.constant 0 : index
    %197 = vector.load %arg10[%c0_74, %c0_75] : memref<32x128xf32, #tpu.memory_space<vmem>>, vector<32x128xf32>
    tpu.vector_store %arg10[%c0_74, %c0_75], %196 {strides = array<i32>} : memref<32x128xf32, #tpu.memory_space<vmem>>, vector<32x128xf32>,
    return
  }
  func.func @transform_0(%arg0: i32) -> (i32, i32) {
    %c0_i32 = arith.constant 0 : i32
    %c0_i32_0 = arith.constant 0 : i32
    return %arg0, %c0_i32 : i32, i32
  }
  func.func @transform_1(%arg0: i32) -> (i32, i32) {
    %c0_i32 = arith.constant 0 : i32
    %c0_i32_0 = arith.constant 0 : i32
    %c0_i32_1 = arith.constant 0 : i32
    return %c0_i32, %c0_i32_0 : i32, i32
  }
  func.func @transform_2(%arg0: i32) -> (i32, i32) {
    %c0_i32 = arith.constant 0 : i32
    %c0_i32_0 = arith.constant 0 : i32
    %c0_i32_1 = arith.constant 0 : i32
    return %c0_i32, %c0_i32_0 : i32, i32
  }
  func.func @transform_3(%arg0: i32) -> (i32, i32) {
    %c0_i32 = arith.constant 0 : i32
    %c0_i32_0 = arith.constant 0 : i32
    %c0_i32_1 = arith.constant 0 : i32
    return %c0_i32, %c0_i32_0 : i32, i32
  }
  func.func @transform_4(%arg0: i32) -> (i32, i32) {
    %c0_i32 = arith.constant 0 : i32
    %c0_i32_0 = arith.constant 0 : i32
    %c0_i32_1 = arith.constant 0 : i32
    return %c0_i32, %c0_i32_0 : i32, i32
  }
  func.func @transform_5(%arg0: i32) -> (i32, i32) {
    %c0_i32 = arith.constant 0 : i32
    %c0_i32_0 = arith.constant 0 : i32
    %c0_i32_1 = arith.constant 0 : i32
    return %c0_i32, %c0_i32_0 : i32, i32
  }
  func.func @transform_6(%arg0: i32) -> (i32, i32) {
    %c0_i32 = arith.constant 0 : i32
    %c0_i32_0 = arith.constant 0 : i32
    %c0_i32_1 = arith.constant 0 : i32
    return %c0_i32, %c0_i32_0 : i32, i32
  }
  func.func @transform_7(%arg0: i32) -> (i32, i32) {
    %c0_i32 = arith.constant 0 : i32
    %c0_i32_0 = arith.constant 0 : i32
    %c0_i32_1 = arith.constant 0 : i32
    return %c0_i32, %c0_i32_0 : i32, i32
  }
  func.func @transform_8(%arg0: i32) -> (i32, i32) {
    %c0_i32 = arith.constant 0 : i32
    %c0_i32_0 = arith.constant 0 : i32
    %c0_i32_1 = arith.constant 0 : i32
    return %c0_i32, %c0_i32_0 : i32, i32
  }
  func.func @transform_9(%arg0: i32) -> (i32, i32) {
    %c0_i32 = arith.constant 0 : i32
    %c0_i32_0 = arith.constant 0 : i32
    return %arg0, %c0_i32 : i32, i32
  }
}

</mosaic_0001>

<bundles_post_ra>
// kernel: tpu_custom_call.1
= control target key start
LH: loop header
LB: loop body
LE: loop exit
PB: predicated region body
PF: predicated region fallthrough
CT: control target
= control target key end

     0   :  { %s3849_s0 = inlined_call_operand.vmem [shape: f32[64,16], index: 0, kind: input, shape index: {}]   ;;  %s3850_s1 = inlined_call_operand.hbm [shape: bf16[16,32], index: 1, kind: input, shape index: {}]   ;;  %s3851_s2 = inlined_call_operand.vmem [shape: bf16[128,32], index: 2, kind: input, shape index: {}]   ;;  %s3852_s3 = inlined_call_operand.vmem [shape: f32[1,128], index: 3, kind: input, shape index: {}]   ;;  %s3853_s4 = inlined_call_operand.vmem [shape: f32[16,128], index: 4, kind: input, shape index: {}]   ;;  %s3854_s5 = inlined_call_operand.hbm [shape: bf16[32,128], index: 5, kind: input, shape index: {}]   ;;  %s3855_s6 = inlined_call_operand.vmem [shape: bf16[256,128], index: 6, kind: input, shape index: {}]   ;;  %s3856_s7 = inlined_call_operand.vmem [shape: f32[1,256], index: 7, kind: input, shape index: {}]   ;;  %s3857_s8 = inlined_call_operand.hbm [shape: f32[32,256], index: 8, kind: input, shape index: {}]   ;;  %s3858_s9 = inlined_call_operand.hbm [shape: f32[64,128], index: 9, kind: output, shape index: {}]  }
   0x1   :  { %3860 = sst [smem:[#allocation14_spill]] %s3850_s1 }
   0x2   :  { %3861 = sst [smem:[#allocation15_spill]] %s3854_s5 }
   0x3   :  { %14 = vsyncpa [#allocation3], 0 }
   0x4   :  { %15 = vsyncpa [#allocation6], 0 }
   0x5   :  { %16 = vsyncpa [#allocation4], 0 }
   0x6   :  { %18 = vsyncpa [#allocation4 + $0x1], 0  ;;  %s3021_s30 = smov 0   ;;  %s3023_s10 = smov 0  }
   0x7   :  { %s3025_s11 = smov 0   ;;  %s3027_s12 = smov 0  }
   0x8 LB: > { %3862 = sst [smem:[#allocation12_spill]] %s2955_s11  ;;  %s3042_s13 = sadd.s32 4294967295, %s2959_s12   ;;  %s2959_s12 = sphi %s3027_s12, %s3884_s12   ;;  %s2955_s11 = sphi %s3025_s11, %s3881_s11   ;;  %s2951_s10 = sphi %s3023_s10, %s3883_s10   ;;  %s2947_s30 = sphi %s3021_s30, %s3882_s30  }
   0x9   : > { %s2429_s14 = sadd.s32 4294967294, %s2959_s12   ;;  %s3046_s15 = sadd.s32 1, %s2959_s12  }
   0xa   : > { %s225_s16 = sadd.s32 1, %s2955_s11  ;;  %s222_s17 = ssub.s32 %s2959_s12, %s3046_s15 }
   0xb   : > { %p235_p0 = scmp.ne.s32.totalorder %s2955_s11, %s2951_s10  ;;  %p223_p1 = scmp.eq.s32.totalorder %s222_s17, 0 }
   0xc   : > { %p236_p2 = scmp.eq.s32.totalorder %s3042_s13, 1  ;;  %p241_p3 = scmp.ne.s32.totalorder %s2951_s10, %s2947_s30 }
   0xd   : > { %p242_p4 = scmp.eq.s32.totalorder %s2429_s14, 1  ;;  %p2430_p7 = scmp.ge.s32.totalorder %s2959_s12, 1 }
   0xe   : > { %s3057_s18 = scalar_select %p223_p1, %s2955_s11, %s225_s16  }
   0xf   : > { %p3059_p5 = por %p236_p2, %p235_p0  ;;  %p3063_p6 = por %p242_p4, %p241_p3 }
  0x10   : > { %3863 = sst [smem:[#allocation13_spill]] %s3057_s18  ;;  %p249_p8 = scmp.lt.s32.totalorder %s2959_s12, 3 }
  0x11   : > { %p2717_p9 = scmp.eq.s32.totalorder %s3042_s13, 0  ;;  %s3867_s5 = sld [smem:[#allocation15_spill]] }
  0x12   : > { %p3070_p10 = pnand %p2430_p7, %p249_p8  ;;  %s3868_s1 = sld [smem:[#allocation14_spill]] }
  0x13   : > { %s2961_s29 = smov [#allocation5]   ;;  %s2962_s16 = smov 64  }
  0x14   : > { %p2703_p11 = pneg %p3070_p10  ;;  %s285_s14 = sshll.u32 %s2961_s29, 4  ;;  %s286_s14 = int_to_ptr.vmem [resolvable:$true] %s285_s14 }
  0x15   : > { %s2963_s17 = smov 4   ;;  %s2964_s22 = smov [#allocation2]  }
  0x16   : > { %p3084_p12 = pnand %p2717_p9, %p2703_p11  ;;  %s262_s23 = sshll.u32 %s2964_s22, 4  ;;  %s263_s23 = int_to_ptr.vmem [resolvable:$true] %s262_s23 }
  0x17   : > { %s283_s24 = sshll.u32 %s3867_s5, 4  ;;  %s2965_s5 = smov [#allocation7]   ;;  %s284_s24 = int_to_ptr.hbm [resolvable:$true] %s283_s24 }
  0x18   : > { %s260_s27 = sshll.u32 %s3868_s1, 4  ;;  %s303_s1 = sshll.u32 %s3857_s8, 4  ;;  %s261_s27 = int_to_ptr.hbm [resolvable:$true] %s260_s27  ;;  %s304_s1 = int_to_ptr.hbm [resolvable:$true] %s303_s1 }
  0x19   : > { %2709 = dma.hbm_to_vmem [thread:$0]  (!%p3084_p12), %s284_s24, 256, %s286_s14, [#allocation6], %s2962_s16, %s2962_s16, %s2963_s17  }
  0x1a   : > { %2706 = dma.hbm_to_vmem [thread:$0]  (!%p3084_p12), %s261_s27, 128, %s263_s23, [#allocation3], %s2962_s16, %s2962_s16, %s2963_s17  }
  0x1b   : > { %s305_s18 = sshll.u32 %s2965_s5, 4  ;;  %s2966_s29 = smov 256   ;;  %s306_s18 = int_to_ptr.vmem [resolvable:$true] %s305_s18 }
  0x1c   : > { %s2967_s11 = smov 16   ;;  %330 = sbr.rel (%p3070_p10) target bundleno = 841 (0x349), region = 56 }
  0x1d   : > { %2712 = dma.hbm_to_vmem [thread:$0]  (!%p3084_p12), %s304_s1, 1024, %s306_s18, [#allocation6], %s2966_s29, %s2966_s29, %s2967_s11  }
  0x21   : > { %2934 = dma.done.wait (%p2717_p9), [#allocation3], 128  }
  0x22   : > { %2936 = vsyncadd (%p2717_p9), [#allocation3], 4294967168 }
  0x23   : > { %2938 = dma.done.wait (%p2717_p9), [#allocation6], 1280  }
  0x24   : > { %2940 = vsyncadd (%p2717_p9), [#allocation6], 4294966016  ;;  %s2440_s5 = sshll.u32 %s3042_s13, 2  ;;  %v482_v0 = vld [vmem:[%s3853_s4 + $0x8] sm:$0xff]  ;;  %v481_v1 = vld [vmem:[%s3853_s4] sm:$0xff]  ;;  %vm483_vm0 = vcmask 130048  }
  0x25   : > { %p378_p13 = scmp.lt.s32.totalorder %s2440_s5, 7  ;;  %v510_v3 = vand.u32 4294901760, %v482_v0  ;;  %v512_v4 = vand.u32 4294901760, %v481_v1  ;;  %v2655_v57 = vld [vmem:[%s3851_s2 + $0x38] sm:$0xff]  ;;  %v2647_v59 = vld [vmem:[#allocation2] sm:$0xff]  ;;  %v2654_v60 = vld [vmem:[%s3851_s2 + $0x30] sm:$0xff] }
  0x26   : > { %s374_s25 = sand.u32 1, %s2951_s10   ;;  %s2909_s17 = scalar_lea.hbm %s3858_s9, 64 }
  0x27   : > { %s3886_s5 = smov (!%p378_p13, %s2440_s5), 7  ;;  %v562_v8 = vsub.f32 %v482_v0, %v510_v3  ;;  %v568_v9 = vsub.f32 %v481_v1, %v512_v4  ;;  %646 = vmatpush.msra.mxu3 %v510_v3  ;;  %511 = vmatpush.msra.mxu0 %v510_v3  ;;  %v2653_v1 = vld [vmem:[%s3851_s2 + $0x28] sm:$0xff]  ;;  %s2439_s26 = sshll.u32 %s374_s25, 5 }
  0x28   : > { %s2441_s1 = sshll.u32 %s3886_s5, 3  ;;  %s376_s29 = scalar_lea.vmem [#allocation8], %s2439_s26 }
  0x29   : > { %s381_s21 = scalar_lea.vmem %s3849_s0, %s2441_s1  ;;  %606 = vmatpush.msra.mxu2 %v562_v8  ;;  %648 = vmatpush.msra.mxu3 %v512_v4  ;;  %v563_v13 = vand.u32 4294901760, %v562_v8  ;;  %v569_v14 = vand.u32 4294901760, %v568_v9  ;;  %s2674_s5 = sshll.u32 %s3042_s13, 5 }
  0x2a   : > { %v3117_v2 = vld [vmem:[%s381_s21] sm:$0xff]  ;;  %v3120_v6 = vld [vmem:[%s381_s21 + $0x8] sm:$0xff]  ;;  %v3122_v7 = vld [vmem:[%s381_s21 + $0x10] sm:$0xff]  ;;  %513 = vmatpush.msra.mxu0 %v512_v4  ;;  %s2332_s18 = scalar_lea.hbm %s3858_s9, %s2674_s5  ;;  %s2321_s27 = scalar_lea.sflag [#allocation4], %s374_s25 }
  0x2b   : > { %v2446_v5 = vadd.f32 2.2, %v3117_v2  ;;  %v2447_v11 = vadd.f32 2.2, %v3120_v6  ;;  %v2448_v15 = vadd.f32 2.2, %v3122_v7  ;;  %609 = vmatpush.msra.mxu2 %v568_v9  ;;  %v564_v19 = vsub.f32 %v562_v8, %v563_v13  ;;  %1044 = vmatpush.bf16.msrb.mxu3 %v2647_v59 }
  0x2c   : > { %v3127_v16 = vld [vmem:[%s381_s21 + $0x18] sm:$0xff]  ;;  %v570_v20 = vsub.f32 %v568_v9, %v569_v14  ;;  %v2442_v48 = vmul.f32 -1.442695, %v3117_v2  ;;  %v2443_v49 = vmul.f32 -1.442695, %v3120_v6  ;;  %v2652_v9 = vld [vmem:[%s3851_s2 + $0x20] sm:$0xff] }
  0x2d   : > { %v477_v10 = vmul.f32 2.5, %v2446_v5  ;;  %v478_v18 = vmul.f32 2.5, %v2447_v11  ;;  %v479_v21 = vmul.f32 2.5, %v2448_v15  ;;  %v2449_v24 = vadd.f32 2.2, %v3127_v16  ;;  %1006 = vmatpush.bf16.msrb.mxu2 %v2655_v57  ;;  %s2333_s21 = sshll.u32 %s376_s29, 4  ;;  %s2334_s21 = int_to_ptr.vmem [resolvable:$true] %s2333_s21 }
  0x2e   : > { %v565_v25 = vand.u32 4294901760, %v564_v19  ;;  %v571_v27 = vand.u32 4294901760, %v570_v20  ;;  %2767 = vpow2.f32 %v2442_v48  ;;  %v2651_v19 = vld [vmem:[%s3851_s2 + $0x18] sm:$0xff]  ;;  %s2335_s24 = sshll.u32 %s2332_s18, 4  ;;  %s2336_s24 = int_to_ptr.hbm [resolvable:$true] %s2335_s24 }
  0x2f   : > { %v485_v12 = vsel %vm483_vm0, %v477_v10, 0  ;;  %v488_v23 = vsel %vm483_vm0, %v478_v18, 0  ;;  %v491_v28 = vsel %vm483_vm0, %v479_v21, 0  ;;  %v480_v34 = vmul.f32 2.5, %v2449_v24  ;;  %s2903_s13 = sshra.s32 %s2336_s24, 4  ;;  %s2904_s13 = int_to_ptr.hbm [resolvable:$true] %s2903_s13 }
  0x30   : > { %v514_v17 = vand.u32 4294901760, %v485_v12  ;;  %v522_v26 = vand.u32 4294901760, %v488_v23  ;;  %566 = vmatpush.msrb.mxu0 %v565_v25  ;;  %2675 = vmatpush.msra.mxu1 %v565_v25  ;;  %v530_v32 = vand.u32 4294901760, %v491_v28  ;;  %2769 = vpow2.f32 %v2443_v49  ;;  %s2905_s28 = scalar_lea.hbm %s2904_s13, 32  ;;  %p2910_p3 = scmp.lt.s32.totalorder %s2904_s13, %s3858_s9 }
  0x31   : > { %v494_v38 = vsel %vm483_vm0, %v480_v34, 0  ;;  %1007 = vmatpush.bf16.msrb.mxu2 %v2654_v60  ;;  %v2445_v18 = vmul.f32 -1.442695, %v3127_v16  ;;  %p2906_p0 = scmp.ne.s32.totalorder %s2904_s13, %s2905_s28  ;;  %p2911_p4 = scmp.lt.s32.totalorder %s2909_s17, %s2905_s28 }
  0x32   : > { %v515_v22 = vsub.f32 %v485_v12, %v514_v17  ;;  %v523_v30 = vsub.f32 %v488_v23, %v522_v26  ;;  %2676 = vmatpush.msra.mxu1 %v571_v27  ;;  %572 = vmatpush.msrb.mxu0 %v571_v27  ;;  %v531_v37 = vsub.f32 %v491_v28, %v530_v32  ;;  %v538_v41 = vand.u32 4294901760, %v494_v38 }
  0x33   : > { %578 = vmatmul.f32.vlgmr.msra.gmra.mxu1 %v522_v26  ;;  %p2907_p1 = pnand %p2906_p0, %p3059_p5  ;;  %p2912_p7 = por %p2911_p4, %p2910_p3 }
  0x34   : > { %612 = vmatmul.f32.vlgmr.msra.gmra.mxu2 %v515_v22  ;;  %v516_v29 = vand.u32 4294901760, %v515_v22  ;;  %v524_v33 = vand.u32 4294901760, %v523_v30  ;;  %728 = vmatpush.msrb.mxu1 %v510_v3  ;;  %v532_v40 = vand.u32 4294901760, %v531_v37  ;;  %v539_v43 = vsub.f32 %v494_v38, %v538_v41  ;;  %v2768_v51 = vpop.eup %2767 }
  0x35   : > { %v401_v54 = vadd.f32 1.0, %v2768_v51  ;;  %1008 = vmatpush.bf16.msrb.mxu2 %v2653_v1  ;;  %v3184_v51 = vld [vmem:[%s3852_s3] ss:$0 sm:$0xff]  ;;  %p2908_p2 = pneg %p2907_p1 }
  0x36   : > { %652 = vmatmul.f32.vlgmr.msra.gmra.mxu3 %v516_v29  ;;  %v517_v31 = vsub.f32 %v515_v22, %v516_v29  ;;  %v525_v36 = vsub.f32 %v523_v30, %v524_v33  ;;  %730 = vmatpush.msrb.mxu1 %v512_v4  ;;  %v533_v42 = vsub.f32 %v531_v37, %v532_v40  ;;  %v540_v45 = vand.u32 4294901760, %v539_v43  ;;  %v2770_v52 = vpop.eup %2769  ;;  %v2650_v29 = vld [vmem:[%s3851_s2 + $0x10] sm:$0xff] }
  0x37   : > { %v402_v56 = vadd.f32 1.0, %v2770_v52  ;;  %2771 = vrcp.f32 %v401_v54  ;;  %v416_v20 = vand.u32 2147483648, %v401_v54  ;;  %vm410_vm1 = vweird.f32 %v401_v54  ;;  %p2913_p8 = pnand %p2912_p7, %p2908_p2 }
  0x38   : > { %v518_v35 = vand.u32 4294901760, %v517_v31  ;;  %v526_v39 = vand.u32 4294901760, %v525_v36  ;;  %v534_v44 = vand.u32 4294901760, %v533_v42  ;;  %v541_v46 = vsub.f32 %v539_v43, %v540_v45 }
  0x39   : > { %2773 = vrcp.f32 %v402_v56  ;;  %1009 = vmatpush.bf16.msrb.mxu2 %v2652_v9  ;;  %v431_v21 = vand.u32 2147483648, %v402_v56  ;;  %v414_v23 = vand.u32 2147483647, %v401_v54  ;;  %v417_v24 = vor.u32 1.1754944e-38, %v416_v20 }
  0x3a   : > { %519 = vmatmul.f32.vlgmr.msra.gmra.mxu0 %v518_v35  ;;  %v542_v47 = vand.u32 4294901760, %v541_v46  ;;  %vm425_vm4 = vweird.f32 %v402_v56  ;;  %v429_v28 = vand.u32 2147483647, %v402_v56 }
  0x3b   : > { %691 = vmatpush.msra.mxu0 %v563_v13  ;;  %582 = vmatmul.f32.gmra.mxu1 %v530_v32  ;;  %v2444_v13 = vmul.f32 -1.442695, %v3122_v7  ;;  %vm415_vm5 = vcmp.eq.f32.partialorder %v414_v23, 8.507059e+37  ;;  %v432_v31 = vor.u32 1.1754944e-38, %v431_v21 }
  0x3c   : > { %617 = vmatmul.f32.gmra.mxu2 %v523_v30  ;;  %vm430_vm8 = vcmp.eq.f32.partialorder %v429_v28, 8.507059e+37 }
  0x3d   : > { %695 = vmatpush.msra.mxu0 %v569_v14  ;;  %v2772_v63 = vpop.eup %2771  ;;  %1010 = vmatpush.bf16.msrb.mxu2 %v2651_v19  ;;  %2775 = vpow2.f32 %v2444_v13 }
  0x3e   : > { %658 = vmatmul.f32.gmra.mxu3 %v524_v33  ;;  %v406_v4 = vmul.f32 %v2772_v63, %v401_v54  ;;  %vm411_vm2 = vweird.f32 %v2772_v63  ;;  %2777 = vpow2.f32 %v2445_v18 }
  0x3f   : > { %v2774_v0 = vpop.eup %2773  ;;  %vm412_vm3 = vmor %vm410_vm1, %vm411_vm2 }
  0x40   : > { %v421_v5 = vmul.f32 %v2774_v0, %v402_v56  ;;  %v407_v11 = vsub.f32 1.0, %v406_v4  ;;  %vm426_vm6 = vweird.f32 %v2774_v0 }
  0x41   : > { %vm427_vm7 = vmor %vm425_vm4, %vm426_vm6  ;;  %1011 = vmatpush.bf16.msrb.mxu2 %v2650_v29 }
  0x42   : > { %527 = vmatmul.f32.gmra.mxu0 %v526_v39  ;;  %v422_v12 = vsub.f32 1.0, %v421_v5  ;;  %v408_v15 = vmul.f32 %v2772_v63, %v407_v11 }
  0x43   : > { %586 = vmatmul.f32.gmra.mxu1 %v538_v41 }
  0x44   : > { %622 = vmatmul.f32.gmra.mxu2 %v531_v37  ;;  %v409_v22 = vadd.f32 %v2772_v63, %v408_v15 }
  0x46   : > { %664 = vmatmul.f32.gmra.mxu3 %v532_v40  ;;  %v413_v27 = vsel %vm412_vm3, %v2772_v63, %v409_v22 }
  0x47   : > { %v418_v30 = vsel %vm415_vm5, %v417_v24, %v413_v27 }
  0x48   : > { %v465_v34 = vmul.f32 %v418_v30, %v3117_v2  ;;  %v2648_v2 = vld [vmem:[%s3851_s2] sm:$0xff] }
  0x4a   : > { %535 = vmatmul.f32.gmra.mxu0 %v534_v44 }
  0x4b   : > { %732 = vmatmul.f32.vlgmr.msrb.gmra.mxu1 %v514_v17 }
  0x4c   : > { %627 = vmatmul.f32.gmra.mxu2 %v539_v43  ;;  %v2776_v43 = vpop.eup %2775 }
  0x4d   : > { %v2778_v44 = vpop.eup %2777 }
  0x4e   : > { %670 = vmatmul.f32.gmra.mxu3 %v540_v45  ;;  %v3179_v49 = vadd.f32 1.0, %v2778_v44 }
  0x52   : > { %543 = vmatmul.f32.gmra.mxu0 %v542_v47 }
  0x53   : > { %736 = vmatmul.f32.gmra.mxu1 %v522_v26 }
  0x5a   : > { %574 = vmatmul.f32.vlgmr.msrb.gmra.mxu0 %v514_v17 }
  0x5b   : > { %740 = vmatmul.f32.gmra.mxu1 %v530_v32 }
  0x62   : > { %697 = vmatmul.f32.vlgmr.msra.gmra.mxu0 %v514_v17  ;;  %v423_v17 = vmul.f32 %v2774_v0, %v422_v12 }
  0x63   : > { %744 = vmatmul.f32.gmra.mxu1 %v538_v41 }
  0x64   : > { %v424_v25 = vadd.f32 %v2774_v0, %v423_v17 }
  0x66   : > { %v428_v33 = vsel %vm427_vm7, %v2774_v0, %v424_v25  ;;  %v2968_v0 = vmov 0.0  }
  0x67   : > { %v433_v37 = vsel %vm430_vm8, %v432_v31, %v428_v33 }
  0x68   : > { %v466_v39 = vmul.f32 %v433_v37, %v3120_v6  ;;  %v3177_v6 = vadd.f32 1.0, %v2776_v43 }
  0x6a   : > { %701 = vmatmul.f32.gmra.mxu0 %v522_v26  ;;  %v469_v42 = vpack.c.bf16 %v466_v39, %v465_v34  ;;  %2779 = vrcp.f32 %v3177_v6  ;;  %v444_v31 = vand.u32 2147483647, %v3177_v6 }
  0x6b   : > { %2781 = vrcp.f32 %v3179_v49 }
  0x6c   : > { %2510 = vmatmul.msk.bf16.vlgmr.msrb.gmra.mxu3 %vm483_vm0, %v469_v42 }
  0x70   : > { %v3206_v5 = vpop.eup %2779 }
  0x71   : > { %v3212_v13 = vpop.eup %2781  ;;  %v436_v30 = vmul.f32 %v3206_v5, %v3177_v6 }
  0x72   : > { %705 = vmatmul.f32.gmra.mxu0 %v530_v32 }
  0x7a   : > { %709 = vmatmul.f32.gmra.mxu0 %v538_v41  ;;  %v2649_v41 = vld [vmem:[%s3851_s2 + $0x8] sm:$0xff] }
  0x7b   : > { %1012 = vmatpush.bf16.msrb.mxu2 %v2649_v41 }
  0x7f   : > { %1013 = vmatpush.bf16.msrb.mxu2 %v2648_v2 }
  0xb0   : > { %v3137_v53 = vpop.f32.mrf.mxu1 }
  0xb7   : > { %v3135_v50 = vpop.f32.mrf.mxu0  ;;  %v613_v58 = vpop.f32.mrf.mxu2 }
  0xb8   : > { %v3149_v62 = vpop.f32.mrf.mxu1 }
  0xb9   : > { %v653_v3 = vpop.f32.mrf.mxu3 }
  0xbf   : > { %v3139_v55 = vpop.f32.mrf.mxu0  ;;  %v618_v8 = vpop.f32.mrf.mxu2 }
  0xc0   : > { %v587_v14 = vpop.f32.mrf.mxu1  ;;  %v580_v45 = vadd.f32 %v3137_v53, %v3139_v55 }
  0xc1   : > { %v659_v26 = vpop.f32.mrf.mxu3 }
  0xc2   : > { %v619_v52 = vadd.f32 %v618_v8, %v580_v45 }
  0xc4   : > { %v660_v59 = vadd.f32 %v659_v26, %v619_v52 }
  0xc7   : > { %v3147_v61 = vpop.f32.mrf.mxu0  ;;  %v623_v35 = vpop.f32.mrf.mxu2 }
  0xc8   : > { %v733_v38 = vpop.f32.mrf.mxu1  ;;  %v584_v53 = vadd.f32 %v3149_v62, %v3147_v61 }
  0xc9   : > { %v665_v47 = vpop.f32.mrf.mxu3 }
  0xca   : > { %v624_v60 = vadd.f32 %v623_v35, %v584_v53 }
  0xcc   : > { %v666_v19 = vadd.f32 %v665_v47, %v624_v60 }
  0xcf   : > { %v544_v10 = vpop.f32.mrf.mxu0  ;;  %v628_v55 = vpop.f32.mrf.mxu2 }
  0xd0   : > { %v588_v54 = vadd.f32 %v587_v14, %v544_v10  ;;  %v737_v57 = vpop.f32.mrf.mxu1 }
  0xd1   : > { %v671_v8 = vpop.f32.mrf.mxu3 }
  0xd2   : > { %v629_v63 = vadd.f32 %v628_v55, %v588_v54 }
  0xd4   : > { %v672_v23 = vadd.f32 %v671_v8, %v629_v63  ;;  %v437_v63 = vsub.f32 1.0, %v436_v30 }
  0xd7   : > { %v575_v32 = vpop.f32.mrf.mxu0 }
  0xd8   : > { %v576_v36 = vadd.f32 %v575_v32, %v3135_v50  ;;  %v741_v27 = vpop.f32.mrf.mxu1 }
  0xda   : > { %v614_v40 = vadd.f32 %v613_v58, %v576_v36 }
  0xdc   : > { %v654_v46 = vadd.f32 %v653_v3, %v614_v40 }
  0xdf   : > { %v698_v48 = vpop.f32.mrf.mxu0 }
  0xe0   : > { %v699_v50 = vadd.f32 %v698_v48, %v654_v46 }
  0xe2   : > { %v734_v56 = vadd.f32 %v733_v38, %v699_v50 }
  0xe4   : > { %v3191_v58 = vsub.f32 %v734_v56, %v3184_v51 }
  0xe6   : > { %vm756_vm9 = vcmp.ge.f32.partialorder %v3191_v58, 0.0  ;;  %vm760_vm10 = vcmp.lt.f32.partialorder %v3191_v58, 1.0  ;;  %vm776_vm11 = vcmp.ge.f32.partialorder %v3191_v58, 1.0  ;;  %vm780_vm12 = vcmp.lt.f32.partialorder %v3191_v58, 2.0 }
  0xe7   : > { %v702_v61 = vpop.f32.mrf.mxu0  ;;  %vm764_vm13 = vmand %vm756_vm9, %vm760_vm10  ;;  %vm796_vm14 = vcmp.ge.f32.partialorder %v3191_v58, 2.0  ;;  %vm800_vm15 = vcmp.lt.f32.partialorder %v3191_v58, 3.0  ;;  %vm816_vm1 = vcmp.ge.f32.partialorder %v3191_v58, 3.0  ;;  %vm820_vm2 = vcmp.lt.f32.partialorder %v3191_v58, 4.0 }
  0xe8   : > { %v703_v62 = vadd.f32 %v702_v61, %v660_v59  ;;  %v2450_v1 = vsel %vm764_vm13, 1.0, %v2968_v0  ;;  %vm784_vm3 = vmand %vm776_vm11, %vm780_vm12  ;;  %v840_v3 = vsub.f32 2.0, %v3191_v58  ;;  %v3204_v4 = vadd.f32 -1.0, %v3191_v58 }
  0xe9   : > { %v2454_v9 = vsel %vm784_vm3, 1.0, %v2968_v0  ;;  %vm804_vm4 = vmand %vm796_vm14, %vm800_vm15  ;;  %v836_v10 = vmul.f32 %v2450_v1, %v3191_v58  ;;  %v860_v11 = vsub.f32 3.0, %v3191_v58  ;;  %v2470_v12 = vadd.f32 -2.0, %v3191_v58  ;;  %v745_v1 = vpop.f32.mrf.mxu1 }
  0xea   : > { %v738_v14 = vadd.f32 %v737_v57, %v703_v62  ;;  %v2458_v15 = vsel %vm804_vm4, 1.0, %v2968_v0  ;;  %vm824_vm5 = vmand %vm816_vm1, %vm820_vm2  ;;  %v844_v17 = vmul.f32 %v2454_v9, %v840_v3  ;;  %v856_v18 = vmul.f32 %v3204_v4, %v2454_v9 }
  0xeb   : > { %v2462_v20 = vsel %vm824_vm5, 1.0, %v2968_v0  ;;  %v864_v21 = vmul.f32 %v2458_v15, %v860_v11  ;;  %v3222_v22 = vsub.f32 4.0, %v3191_v58  ;;  %v876_v26 = vmul.f32 %v2470_v12, %v2458_v15 }
  0xec   : > { %v3225_v24 = vsub.f32 %v738_v14, %v3184_v51  ;;  %v848_v25 = vadd.f32 %v844_v17, %v836_v10  ;;  %vm440_vm10 = vweird.f32 %v3177_v6  ;;  %vm441_vm11 = vweird.f32 %v3206_v5 }
  0xed   : > { %v868_v28 = vadd.f32 %v864_v21, %v856_v18  ;;  %v884_v29 = vmul.f32 %v2462_v20, %v3222_v22  ;;  %vm3258_vm5 = vcmp.eq.f32.partialorder %v444_v31, 8.507059e+37  ;;  %v451_v20 = vmul.f32 %v3212_v13, %v3179_v49 }
  0xee   : > { %vm757_vm6 = vcmp.ge.f32.partialorder %v3225_v24, 0.0  ;;  %vm761_vm7 = vcmp.lt.f32.partialorder %v3225_v24, 1.0  ;;  %vm777_vm8 = vcmp.ge.f32.partialorder %v3225_v24, 1.0  ;;  %vm781_vm9 = vcmp.lt.f32.partialorder %v3225_v24, 2.0 }
  0xef   : > { %v706_v32 = vpop.f32.mrf.mxu0  ;;  %vm765_vm12 = vmand %vm757_vm6, %vm761_vm7  ;;  %vm797_vm13 = vcmp.ge.f32.partialorder %v3225_v24, 2.0  ;;  %vm801_vm14 = vcmp.lt.f32.partialorder %v3225_v24, 3.0  ;;  %vm817_vm15 = vcmp.ge.f32.partialorder %v3225_v24, 3.0  ;;  %vm821_vm1 = vcmp.lt.f32.partialorder %v3225_v24, 4.0 }
  0xf0   : > { %v707_v33 = vadd.f32 %v706_v32, %v666_v19  ;;  %v2451_v34 = vsel %vm765_vm12, 1.0, %v2968_v0  ;;  %vm785_vm2 = vmand %vm777_vm8, %vm781_vm9  ;;  %v841_v35 = vsub.f32 2.0, %v3225_v24  ;;  %v2467_v36 = vadd.f32 -1.0, %v3225_v24 }
  0xf1   : > { %v2455_v37 = vsel %vm785_vm2, 1.0, %v2968_v0  ;;  %vm805_vm3 = vmand %vm797_vm13, %vm801_vm14  ;;  %v837_v38 = vmul.f32 %v2451_v34, %v3225_v24  ;;  %v861_v39 = vsub.f32 3.0, %v3225_v24  ;;  %v2471_v40 = vadd.f32 -2.0, %v3225_v24 }
  0xf2   : > { %v742_v41 = vadd.f32 %v741_v27, %v707_v33  ;;  %v2459_v42 = vsel %vm805_vm3, 1.0, %v2968_v0  ;;  %vm825_vm4 = vmand %vm817_vm15, %vm821_vm1  ;;  %v845_v43 = vmul.f32 %v2455_v37, %v841_v35  ;;  %v857_v2 = vmul.f32 %v2467_v36, %v2455_v37 }
  0xf3   : > { %v2463_v44 = vsel %vm825_vm4, 1.0, %v2968_v0  ;;  %v865_v45 = vmul.f32 %v2459_v42, %v861_v39  ;;  %v877_v46 = vmul.f32 %v2471_v40, %v2459_v42  ;;  %v881_v47 = vsub.f32 4.0, %v3225_v24  ;;  %vm3268_vm6 = vmor %vm440_vm10, %vm441_vm11 }
  0xf4   : > { %v3252_v48 = vsub.f32 %v742_v41, %v3184_v51  ;;  %v849_v50 = vadd.f32 %v845_v43, %v837_v38  ;;  %v888_v52 = vadd.f32 %v884_v29, %v876_v26  ;;  %v892_v53 = vmul.f32 %v848_v25, %v3191_v58 }
  0xf5   : > { %v869_v54 = vadd.f32 %v865_v45, %v857_v2  ;;  %v885_v55 = vmul.f32 %v2463_v44, %v881_v47  ;;  %v896_v56 = vmul.f32 %v868_v28, %v860_v11  ;;  %v908_v57 = vmul.f32 %v3204_v4, %v868_v28 }
  0xf6   : > { %v893_v59 = vmul.f32 %v849_v50, %v3225_v24  ;;  %v912_v60 = vmul.f32 %v888_v52, %v3222_v22  ;;  %v438_v11 = vmul.f32 %v3206_v5, %v437_v63  ;;  %v446_v4 = vand.u32 2147483648, %v3177_v6 }
  0xf7   : > { %v710_v62 = vpop.f32.mrf.mxu0  ;;  %v889_v3 = vadd.f32 %v885_v55, %v877_v46  ;;  %v897_v8 = vmul.f32 %v869_v54, %v861_v39  ;;  %v900_v9 = vadd.f32 %v896_v56, %v892_v53  ;;  %v909_v10 = vmul.f32 %v2467_v36, %v869_v54 }
  0xf8   : > { %v711_v12 = vadd.f32 %v710_v62, %v672_v23  ;;  %v916_v14 = vadd.f32 %v912_v60, %v908_v57  ;;  %v439_v25 = vadd.f32 %v3206_v5, %v438_v11  ;;  %v447_v26 = vor.u32 1.1754944e-38, %v446_v4 }
  0xf9   : > { %v901_v15 = vadd.f32 %v897_v8, %v893_v59  ;;  %v904_v17 = vmul.f32 0.5, %v900_v9  ;;  %v913_v18 = vmul.f32 %v889_v3, %v881_v47  ;;  %v452_v30 = vsub.f32 1.0, %v451_v20 }
  0xfa   : > { %v746_v21 = vadd.f32 %v745_v1, %v711_v12  ;;  %v920_v23 = vmul.f32 0.5, %v916_v14  ;;  %v443_v32 = vsel %vm3268_vm6, %v3206_v5, %v439_v25  ;;  %vm455_vm7 = vweird.f32 %v3179_v49 }
  0xfb   : > { %v905_v27 = vmul.f32 0.5, %v901_v15  ;;  %v917_v28 = vadd.f32 %v913_v18, %v909_v10  ;;  %v924_v29 = vmul.f32 %v904_v17, %v3191_v58  ;;  %v448_v35 = vsel %vm3258_vm5, %v447_v26, %v443_v32 }
  0xfc   : > { %v3277_v31 = vsub.f32 %v746_v21, %v3184_v51  ;;  %v928_v6 = vmul.f32 %v920_v23, %v3222_v22  ;;  %v453_v58 = vmul.f32 %v3212_v13, %v452_v30  ;;  %vm456_vm8 = vweird.f32 %v3212_v13 }
  0xfd   : > { %v921_v33 = vmul.f32 0.5, %v917_v28  ;;  %v925_v34 = vmul.f32 %v905_v27, %v3225_v24  ;;  %v459_v51 = vand.u32 2147483647, %v3179_v49  ;;  %v461_v22 = vand.u32 2147483648, %v3179_v49  ;;  %vm457_vm9 = vmor %vm455_vm7, %vm456_vm8 }
  0xfe   : > { %v932_v36 = vadd.f32 %v928_v6, %v924_v29  ;;  %v454_v5 = vadd.f32 %v3212_v13, %v453_v58  ;;  %v467_v38 = vmul.f32 %v448_v35, %v3122_v7  ;;  %vm758_vm10 = vcmp.ge.f32.partialorder %v3252_v48, 0.0 }
  0xff   : > { %v929_v37 = vmul.f32 %v921_v33, %v881_v47  ;;  %vm460_vm11 = vcmp.eq.f32.partialorder %v459_v51, 8.507059e+37  ;;  %v462_v39 = vor.u32 1.1754944e-38, %v461_v22  ;;  %vm759_vm12 = vcmp.ge.f32.partialorder %v3277_v31, 0.0 }
 0x100   : > { %v936_v24 = vmul.f32 0.33333334, %v932_v36  ;;  %v458_v41 = vsel %vm457_vm9, %v3212_v13, %v454_v5  ;;  %vm762_vm13 = vcmp.lt.f32.partialorder %v3252_v48, 1.0  ;;  %vm763_vm14 = vcmp.lt.f32.partialorder %v3277_v31, 1.0 }
 0x101   : > { %v933_v40 = vadd.f32 %v929_v37, %v925_v34  ;;  %v463_v49 = vsel %vm460_vm11, %v462_v39, %v458_v41  ;;  %vm766_vm15 = vmand %vm758_vm10, %vm762_vm13  ;;  %vm778_vm1 = vcmp.ge.f32.partialorder %v3252_v48, 1.0  ;;  %vm779_vm2 = vcmp.ge.f32.partialorder %v3277_v31, 1.0 }
 0x102   : > { %vm782_vm3 = vcmp.lt.f32.partialorder %v3252_v48, 2.0  ;;  %v468_v42 = vmul.f32 %v463_v49, %v3127_v16  ;;  %vm767_vm4 = vmand %vm759_vm12, %vm763_vm14  ;;  %v2452_v43 = vsel %vm766_vm15, 1.0, %v2968_v0  ;;  %vm783_vm5 = vcmp.lt.f32.partialorder %v3277_v31, 2.0 }
 0x103   : > { %v937_v7 = vmul.f32 0.33333334, %v933_v40  ;;  %v2453_v13 = vsel %vm767_vm4, 1.0, %v2968_v0  ;;  %vm786_vm6 = vmand %vm778_vm1, %vm782_vm3  ;;  %vm798_vm7 = vcmp.ge.f32.partialorder %v3252_v48, 2.0  ;;  %vm799_vm8 = vcmp.ge.f32.partialorder %v3277_v31, 2.0 }
 0x104   : > { %vm802_vm9 = vcmp.lt.f32.partialorder %v3252_v48, 3.0  ;;  %v470_v44 = vpack.c.bf16 %v468_v42, %v467_v38  ;;  %vm787_vm10 = vmand %vm779_vm2, %vm783_vm5  ;;  %v2456_v45 = vsel %vm786_vm6, 1.0, %v2968_v0  ;;  %vm803_vm11 = vcmp.lt.f32.partialorder %v3277_v31, 3.0 }
 0x105   : > { %v940_v2 = vpack.c.bf16 %v937_v7, %v936_v24  ;;  %v2457_v16 = vsel %vm787_vm10, 1.0, %v2968_v0  ;;  %vm806_vm12 = vmand %vm798_vm7, %vm802_vm9  ;;  %vm818_vm13 = vcmp.ge.f32.partialorder %v3252_v48, 3.0  ;;  %vm819_vm14 = vcmp.ge.f32.partialorder %v3277_v31, 3.0 }
 0x106   : > { %vm822_vm15 = vcmp.lt.f32.partialorder %v3252_v48, 4.0  ;;  %2511 = vmatmul.msk.bf16.gmra.mxu3 %vm483_vm0, %v470_v44  ;;  %vm807_vm1 = vmand %vm799_vm8, %vm803_vm11  ;;  %v2460_v46 = vsel %vm806_vm12, 1.0, %v2968_v0  ;;  %vm823_vm2 = vcmp.lt.f32.partialorder %v3277_v31, 4.0  ;;  %v838_v47 = vmul.f32 %v2452_v43, %v3252_v48 }
 0x107   : > { %1014 = vmatmul.bf16.vlgmr.msrb.gmra.mxu2 %v940_v2  ;;  %v839_v50 = vmul.f32 %v2453_v13, %v3277_v31  ;;  %v2461_v52 = vsel %vm807_vm1, 1.0, %v2968_v0  ;;  %vm826_vm3 = vmand %vm818_vm13, %vm822_vm15  ;;  %v842_v53 = vsub.f32 2.0, %v3252_v48  ;;  %v843_v54 = vsub.f32 2.0, %v3277_v31  ;;  %v1156_v2 = vld [vmem:[#allocation7 + $0x30] sm:$0xff] }
 0x108   : > { %v2468_v55 = vadd.f32 -1.0, %v3252_v48  ;;  %vm827_vm4 = vmand %vm819_vm14, %vm823_vm2  ;;  %v2464_v56 = vsel %vm826_vm3, 1.0, %v2968_v0  ;;  %v2469_v57 = vadd.f32 -1.0, %v3277_v31  ;;  %v862_v59 = vsub.f32 3.0, %v3252_v48 }
 0x109   : > { %v863_v60 = vsub.f32 3.0, %v3277_v31  ;;  %v2465_v63 = vsel %vm827_vm4, 1.0, %v2968_v0  ;;  %v846_v61 = vmul.f32 %v2456_v45, %v842_v53  ;;  %v847_v62 = vmul.f32 %v2457_v16, %v843_v54 }
 0x10a   : > { %v858_v1 = vmul.f32 %v2468_v55, %v2456_v45  ;;  %v859_v3 = vmul.f32 %v2469_v57, %v2457_v16  ;;  %v866_v8 = vmul.f32 %v2460_v46, %v862_v59  ;;  %v2472_v10 = vadd.f32 -2.0, %v3252_v48  ;;  %v1154_v45 = vld [vmem:[#allocation7 + $0x20] sm:$0xff] }
 0x10b   : > { %v867_v9 = vmul.f32 %v2461_v52, %v863_v60  ;;  %v850_v12 = vadd.f32 %v846_v61, %v838_v47  ;;  %v851_v14 = vadd.f32 %v847_v62, %v839_v50  ;;  %v2473_v11 = vadd.f32 -2.0, %v3277_v31  ;;  %v1152_v47 = vld [vmem:[#allocation7 + $0x10] sm:$0xff] }
 0x10c   : > { %v882_v4 = vsub.f32 4.0, %v3252_v48  ;;  %v870_v15 = vadd.f32 %v866_v8, %v858_v1  ;;  %v878_v18 = vmul.f32 %v2472_v10, %v2460_v46  ;;  %v883_v19 = vsub.f32 4.0, %v3277_v31  ;;  %v1046_v10 = vpop.f32.mrf.mxu3 }
 0x10d   : > { %v871_v17 = vadd.f32 %v867_v9, %v859_v3  ;;  %v879_v20 = vmul.f32 %v2473_v11, %v2461_v52  ;;  %v894_v23 = vmul.f32 %v850_v12, %v3252_v48  ;;  %v895_v25 = vmul.f32 %v851_v14, %v3277_v31  ;;  %v1150_v52 = vld [vmem:[#allocation7] sm:$0xff] }
 0x10e   : > { %v886_v21 = vmul.f32 %v2464_v56, %v882_v4  ;;  %v887_v26 = vmul.f32 %v2465_v63, %v883_v19  ;;  %v898_v27 = vmul.f32 %v870_v15, %v862_v59  ;;  %v910_v30 = vmul.f32 %v2468_v55, %v870_v15 }
 0x10f   : > { %v899_v28 = vmul.f32 %v871_v17, %v863_v60  ;;  %v911_v34 = vmul.f32 %v2469_v57, %v871_v17  ;;  %v1183_v44 = vand.u32 4294901760, %v1156_v2  ;;  %v1185_v46 = vand.u32 4294901760, %v1154_v45 }
 0x110   : > { %v890_v29 = vadd.f32 %v886_v21, %v878_v18  ;;  %v891_v6 = vadd.f32 %v887_v26, %v879_v20  ;;  %v902_v32 = vadd.f32 %v898_v27, %v894_v23  ;;  %v1189_v56 = vand.u32 4294901760, %v1150_v52 }
 0x111   : > { %v903_v33 = vadd.f32 %v899_v28, %v895_v25  ;;  %v1237_v16 = vsub.f32 %v1156_v2, %v1183_v44  ;;  %1184 = vmatpush.msrb.mxu0 %v1183_v44  ;;  %vm1158_vm0 = vcmask 261120  }
 0x112   : > { %v914_v35 = vmul.f32 %v890_v29, %v882_v4  ;;  %v906_v58 = vmul.f32 0.5, %v902_v32  ;;  %v915_v51 = vmul.f32 %v891_v6, %v883_v19  ;;  %v1255_v63 = vsub.f32 %v1150_v52, %v1189_v56 }
 0x113   : > { %v907_v36 = vmul.f32 0.5, %v903_v33  ;;  %v1238_v50 = vand.u32 4294901760, %v1237_v16  ;;  %2677 = vmatpush.msra.mxu3 %v1237_v16  ;;  %1291 = vmatpush.msra.mxu2 %v1237_v16  ;;  %v1155_v33 = vld [vmem:[#allocation7 + $0x28] sm:$0xff] }
 0x114   : > { %v918_v22 = vadd.f32 %v914_v35, %v910_v30  ;;  %v919_v37 = vadd.f32 %v915_v51, %v911_v34  ;;  %v926_v38 = vmul.f32 %v906_v58, %v3252_v48  ;;  %v1243_v48 = vsub.f32 %v1154_v45, %v1185_v46  ;;  %1186 = vmatpush.msrb.mxu0 %v1185_v46  ;;  %v1157_v30 = vld [vmem:[#allocation7 + $0x38] sm:$0xff] }
 0x115   : > { %v927_v39 = vmul.f32 %v907_v36, %v3277_v31  ;;  %v1187_v31 = vand.u32 4294901760, %v1152_v47  ;;  %v1239_v53 = vsub.f32 %v1237_v16, %v1238_v50  ;;  %v1256_v1 = vand.u32 4294901760, %v1255_v63  ;;  %v3366_v51 = vld [vmem:[#allocation7 + $0x18] sm:$0xff] }
 0x116   : > { %v922_v5 = vmul.f32 0.5, %v918_v22  ;;  %v923_v24 = vmul.f32 0.5, %v919_v37  ;;  %v1244_v54 = vand.u32 4294901760, %v1243_v48  ;;  %1294 = vmatpush.msra.mxu2 %v1243_v48  ;;  %2678 = vmatpush.msra.mxu3 %v1243_v48  ;;  %v3355_v32 = vand.u32 4294901760, %v1157_v30 }
 0x117   : > { %v1249_v55 = vsub.f32 %v1152_v47, %v1187_v31  ;;  %1188 = vmatpush.msrb.mxu0 %v1187_v31  ;;  %v1240_v57 = vand.u32 4294901760, %v1239_v53  ;;  %v1257_v8 = vsub.f32 %v1255_v63, %v1256_v1  ;;  %v3361_v58 = vand.u32 4294901760, %v1155_v33 }
 0x118   : > { %v930_v40 = vmul.f32 %v922_v5, %v882_v4  ;;  %v931_v41 = vmul.f32 %v923_v24, %v883_v19  ;;  %v1245_v59 = vsub.f32 %v1243_v48, %v1244_v54  ;;  %v1048_v19 = vpop.f32.mrf.mxu3  ;;  %v3372_v37 = vand.u32 4294901760, %v3366_v51 }
 0x119   : > { %v1250_v60 = vand.u32 4294901760, %v1249_v55  ;;  %1297 = vmatpush.msra.mxu2 %v1249_v55  ;;  %2679 = vmatpush.msra.mxu3 %v1249_v55  ;;  %v1258_v9 = vand.u32 4294901760, %v1257_v8 }
 0x11a   : > { %v934_v49 = vadd.f32 %v930_v40, %v926_v38  ;;  %v935_v7 = vadd.f32 %v931_v41, %v927_v39  ;;  %1190 = vmatpush.msrb.mxu0 %v1189_v56  ;;  %1241 = vmatpush.msra.mxu1 %v1240_v57  ;;  %v1246_v61 = vand.u32 4294901760, %v1245_v59  ;;  %v3379_v38 = vld [vmem:[#allocation7 + $0x8] sm:$0xff] }
 0x11b   : > { %v1251_v62 = vsub.f32 %v1249_v55, %v1250_v60  ;;  %1300 = vmatpush.msra.mxu2 %v1255_v63  ;;  %2680 = vmatpush.msra.mxu3 %v1255_v63  ;;  %v3384_v39 = vand.u32 4294901760, %v3379_v38 }
 0x11c   : > { %v938_v42 = vmul.f32 0.33333334, %v934_v49  ;;  %v939_v43 = vmul.f32 0.33333334, %v935_v7  ;;  %1382 = vmatpush.msra.mxu0 %v1238_v50  ;;  %1247 = vmatpush.msra.mxu1 %v1246_v61  ;;  %v1515_v61 = vsub.f32 %v1157_v30, %v3355_v32 }
 0x11d   : > { %v1252_v3 = vand.u32 4294901760, %v1251_v62  ;;  %1335 = vmatpush.msrb.mxu3 %v1183_v44  ;;  %1462 = vmatpush.msrb.mxu2 %v3355_v32  ;;  %v1521_v62 = vsub.f32 %v1155_v33, %v3361_v58 }
 0x11e   : > { %v941_v13 = vpack.c.bf16 %v939_v43, %v938_v42  ;;  %1386 = vmatpush.msra.mxu0 %v1244_v54 }
 0x11f   : > { %1253 = vmatpush.msra.mxu1 %v1252_v3  ;;  %1337 = vmatpush.msrb.mxu3 %v1185_v46 }
 0x120   : > { %1019 = vmatmul.bf16.gmra.mxu2 %v941_v13  ;;  %1390 = vmatpush.msra.mxu0 %v1250_v60 }
 0x121   : > { %1259 = vmatpush.msra.mxu1 %v1258_v9  ;;  %1339 = vmatpush.msrb.mxu3 %v1187_v31 }
 0x122   : > { %1394 = vmatpush.msra.mxu0 %v1256_v1  ;;  %1464 = vmatpush.msrb.mxu2 %v3361_v58 }
 0x123   : > { %1425 = vmatpush.msrb.mxu1 %v1183_v44  ;;  %1341 = vmatpush.msrb.mxu3 %v1189_v56 }
 0x124   : > { %1466 = vmatpush.msrb.mxu2 %v3372_v37 }
 0x125   : > { %1427 = vmatpush.msrb.mxu1 %v1185_v46 }
 0x126   : > { %1468 = vmatpush.msrb.mxu2 %v3384_v39 }
 0x127   : > { %1429 = vmatpush.msrb.mxu1 %v1187_v31 }
 0x129   : > { %1431 = vmatpush.msrb.mxu1 %v1189_v56 }
 0x189   : > { %v1051_v13 = vpop.f32.mrf.mxu3 }
 0x18a   : > { %v1015_v12 = vpop.f32.mrf.mxu2 }
 0x18b   : > { %v3336_v14 = vadd.f32 %v1046_v10, %v1015_v12 }
 0x18d   : > { %v2512_v11 = vmul.f32 -1.442695, %v3336_v14  ;;  %v2516_v4 = vadd.f32 2.2, %v3336_v14 }
 0x18f   : > { %2783 = vpow2.f32 %v2512_v11  ;;  %v1146_v15 = vmul.f32 2.5, %v2516_v4  ;;  %v1516_v4 = vand.u32 4294901760, %v1515_v61 }
 0x191   : > { %v1160_v17 = vsel %vm1158_vm0, %v1146_v15, 0  ;;  %v1053_v8 = vpop.f32.mrf.mxu3  ;;  %v1517_v33 = vsub.f32 %v1515_v61, %v1516_v4 }
 0x192   : > { %v3341_v18 = vand.u32 4294901760, %v1160_v17  ;;  %v1017_v20 = vpop.f32.mrf.mxu2 }
 0x193   : > { %v3343_v21 = vadd.f32 %v1048_v19, %v1017_v20 }
 0x194   : > { %1261 = vmatmul.f32.vlgmr.msra.gmra.mxu1 %v3341_v18  ;;  %v3347_v23 = vsub.f32 %v1160_v17, %v3341_v18  ;;  %v1522_v17 = vand.u32 4294901760, %v1521_v62 }
 0x195   : > { %v2784_v25 = vpop.eup %2783  ;;  %v2513_v26 = vmul.f32 -1.442695, %v3343_v21  ;;  %v2517_v27 = vadd.f32 2.2, %v3343_v21  ;;  %1613 = vmatpush.msra.mxu1 %v3355_v32 }
 0x196   : > { %v1068_v28 = vadd.f32 1.0, %v2784_v25  ;;  %1303 = vmatmul.f32.vlgmr.msra.gmra.mxu2 %v3347_v23  ;;  %v3353_v29 = vand.u32 4294901760, %v3347_v23 }
 0x197   : > { %2785 = vpow2.f32 %v2513_v26  ;;  %v1147_v6 = vmul.f32 2.5, %v2517_v27  ;;  %1615 = vmatpush.msra.mxu1 %v3361_v58  ;;  %1660 = vmatpush.msra.mxu2 %v1516_v4 }
 0x198   : > { %2787 = vrcp.f32 %v1068_v28  ;;  %v1194_v35 = vsub.f32 %v3347_v23, %v3353_v29  ;;  %v1081_v46 = vand.u32 2147483647, %v1068_v28  ;;  %v1083_v48 = vand.u32 2147483648, %v1068_v28 }
 0x199   : > { %v1163_v34 = vsel %vm1158_vm0, %v1147_v6, 0  ;;  %1617 = vmatpush.msra.mxu1 %v3372_v37  ;;  %vm1077_vm6 = vweird.f32 %v1068_v28  ;;  %1664 = vmatpush.msra.mxu2 %v1522_v17 }
 0x19a   : > { %v3364_v36 = vand.u32 4294901760, %v1163_v34  ;;  %v3368_v22 = vand.u32 4294901760, %v1194_v35  ;;  %vm1082_vm8 = vcmp.eq.f32.partialorder %v1081_v46, 8.507059e+37  ;;  %v1084_v56 = vor.u32 1.1754944e-38, %v1083_v48 }
 0x19b   : > { %1619 = vmatpush.msra.mxu1 %v3384_v39 }
 0x19c   : > { %1265 = vmatmul.f32.gmra.mxu1 %v3364_v36  ;;  %v3377_v5 = vsub.f32 %v1163_v34, %v3364_v36  ;;  %1196 = vmatmul.f32.vlgmr.msrb.gmra.mxu0 %v3368_v22 }
 0x19d   : > { %v2786_v24 = vpop.eup %2785  ;;  %1569 = vmatpush.msrb.mxu0 %v1515_v61 }
 0x19e   : > { %v2788_v40 = vpop.eup %2787  ;;  %v1069_v41 = vadd.f32 1.0, %v2786_v24  ;;  %1308 = vmatmul.f32.gmra.mxu2 %v3377_v5  ;;  %v3388_v49 = vand.u32 4294901760, %v3377_v5 }
 0x19f   : > { %v1073_v7 = vmul.f32 %v2788_v40, %v1068_v28  ;;  %vm1078_vm5 = vweird.f32 %v2788_v40  ;;  %1572 = vmatpush.msrb.mxu0 %v1521_v62 }
 0x1a0   : > { %2789 = vrcp.f32 %v1069_v41  ;;  %v1202_v43 = vsub.f32 %v3377_v5, %v3388_v49  ;;  %vm1079_vm7 = vmor %vm1077_vm6, %vm1078_vm5  ;;  %v1096_v57 = vand.u32 2147483647, %v1069_v41  ;;  %v1098_v59 = vand.u32 2147483648, %v1069_v41 }
 0x1a1   : > { %v1074_v42 = vsub.f32 1.0, %v1073_v7  ;;  %vm1092_vm10 = vweird.f32 %v1069_v41 }
 0x1a2   : > { %v3395_v44 = vand.u32 4294901760, %v1202_v43  ;;  %vm1097_vm12 = vcmp.eq.f32.partialorder %v1096_v57, 8.507059e+37  ;;  %v1099_v15 = vor.u32 1.1754944e-38, %v1098_v59  ;;  %v1518_v43 = vand.u32 4294901760, %v1517_v33  ;;  %v2662_v33 = vld [vmem:[%s3855_s6 + $0x20] sm:$0xff] }
 0x1a3   : > { %v1075_v2 = vmul.f32 %v2788_v40, %v1074_v42  ;;  %v1020_v45 = vpop.f32.mrf.mxu2 }
 0x1a4   : > { %v3397_v47 = vadd.f32 %v1051_v13, %v1020_v45  ;;  %1204 = vmatmul.f32.gmra.mxu0 %v3395_v44  ;;  %v1527_v13 = vsub.f32 %v3366_v51, %v3372_v37 }
 0x1a5   : > { %v1076_v16 = vadd.f32 %v2788_v40, %v1075_v2 }
 0x1a6   : > { %v2790_v50 = vpop.eup %2789  ;;  %v2514_v52 = vmul.f32 -1.442695, %v3397_v47  ;;  %v2518_v53 = vadd.f32 2.2, %v3397_v47  ;;  %v1528_v46 = vand.u32 4294901760, %v1527_v13  ;;  %1575 = vmatpush.msrb.mxu0 %v1527_v13 }
 0x1a7   : > { %v1088_v31 = vmul.f32 %v2790_v50, %v1069_v41  ;;  %v1080_v54 = vsel %vm1079_vm7, %v2788_v40, %v1076_v16  ;;  %vm1093_vm9 = vweird.f32 %v2790_v50 }
 0x1a8   : > { %2791 = vpow2.f32 %v2514_v52  ;;  %v1148_v60 = vmul.f32 2.5, %v2518_v53  ;;  %v1085_v1 = vsel %vm1082_vm8, %v1084_v56, %v1080_v54  ;;  %vm1094_vm11 = vmor %vm1092_vm10, %vm1093_vm9  ;;  %v1529_v53 = vsub.f32 %v1527_v13, %v1528_v46  ;;  %1668 = vmatpush.msra.mxu2 %v1528_v46 }
 0x1a9   : > { %v1089_v55 = vsub.f32 1.0, %v1088_v31  ;;  %v3416_v28 = vmul.f32 %v1085_v1, %v3336_v14 }
 0x1aa   : > { %v1166_v3 = vsel %vm1158_vm0, %v1148_v60, 0  ;;  %v1530_v56 = vand.u32 4294901760, %v1529_v53 }
 0x1ab   : > { %v1090_v63 = vmul.f32 %v2790_v50, %v1089_v55  ;;  %v1022_v9 = vpop.f32.mrf.mxu2  ;;  %v3405_v12 = vand.u32 4294901760, %v1166_v3 }
 0x1ac   : > { %v3407_v11 = vadd.f32 %v1053_v8, %v1022_v9 }
 0x1ad   : > { %v1091_v10 = vadd.f32 %v2790_v50, %v1090_v63  ;;  %1269 = vmatmul.f32.gmra.mxu1 %v3405_v12  ;;  %v3413_v27 = vsub.f32 %v1166_v3, %v3405_v12 }
 0x1ae   : > { %v2792_v19 = vpop.eup %2791  ;;  %v2515_v25 = vmul.f32 -1.442695, %v3407_v11  ;;  %v2519_v26 = vadd.f32 2.2, %v3407_v11 }
 0x1af   : > { %v1095_v20 = vsel %vm1094_vm11, %v2790_v50, %v1091_v10  ;;  %v3418_v6 = vadd.f32 1.0, %v2792_v19  ;;  %1313 = vmatmul.f32.gmra.mxu2 %v3413_v27  ;;  %v3425_v24 = vand.u32 4294901760, %v3413_v27  ;;  %v1533_v50 = vsub.f32 %v3379_v38, %v3384_v39 }
 0x1b0   : > { %v1100_v30 = vsel %vm1097_vm12, %v1099_v15, %v1095_v20  ;;  %2793 = vpow2.f32 %v2515_v25  ;;  %v1149_v35 = vmul.f32 2.5, %v2519_v26 }
 0x1b1   : > { %v3421_v34 = vmul.f32 %v1100_v30, %v3343_v21  ;;  %2795 = vrcp.f32 %v3418_v6  ;;  %v1210_v41 = vsub.f32 %v3413_v27, %v3425_v24  ;;  %v1523_v21 = vsub.f32 %v1521_v62, %v1522_v17  ;;  %1578 = vmatpush.msrb.mxu0 %v1533_v50  ;;  %v2657_v30 = vld [vmem:[#allocation5 + $0x8] sm:$0xff] }
 0x1b2   : > { %v1169_v40 = vsel %vm1158_vm0, %v1149_v35, 0  ;;  %v1534_v54 = vand.u32 4294901760, %v1533_v50  ;;  %v1113_v1 = vand.u32 2147483648, %v3418_v6  ;;  %vm1107_vm14 = vweird.f32 %v3418_v6 }
 0x1b3   : > { %v1136_v14 = vpack.c.bf16 %v3421_v34, %v3416_v28  ;;  %v3433_v7 = vand.u32 4294901760, %v1169_v40  ;;  %v3435_v42 = vand.u32 4294901760, %v1210_v41  ;;  %v1524_v16 = vand.u32 4294901760, %v1523_v21 }
 0x1b4   : > { %v1535_v57 = vsub.f32 %v1533_v50, %v1534_v54  ;;  %1672 = vmatpush.msra.mxu2 %v1534_v54  ;;  %v1111_v3 = vand.u32 2147483647, %v3418_v6  ;;  %v1114_v17 = vor.u32 1.1754944e-38, %v1113_v1 }
 0x1b5   : > { %v3440_v2 = vsub.f32 %v1169_v40, %v3433_v7  ;;  %1212 = vmatmul.f32.gmra.mxu0 %v3435_v42  ;;  %1273 = vmatmul.f32.gmra.mxu1 %v3433_v7 }
 0x1b6   : > { %v2794_v45 = vpop.eup %2793  ;;  %v1536_v63 = vand.u32 4294901760, %v1535_v57  ;;  %vm1112_vm2 = vcmp.eq.f32.partialorder %v1111_v3, 8.507059e+37 }
 0x1b7   : > { %v2796_v48 = vpop.eup %2795  ;;  %v1071_v31 = vadd.f32 1.0, %v2794_v45  ;;  %1318 = vmatmul.f32.vlgmr.msra.gmra.mxu3 %v3440_v2  ;;  %v3448_v52 = vand.u32 4294901760, %v3440_v2  ;;  %1474 = vmatmul.f32.vlgmr.msrb.gmra.mxu2 %v3368_v22  ;;  %v2659_v45 = vld [vmem:[%s3855_s6 + $0x8] sm:$0xff] }
 0x1b8   : > { %v1103_v51 = vmul.f32 %v2796_v48, %v3418_v6  ;;  %1519 = vmatpush.msra.mxu3 %v1518_v43  ;;  %vm1108_vm13 = vweird.f32 %v2796_v48  ;;  %2303 = vmatpush.bf16.msrb.mxu2 %v2657_v30  ;;  %v2656_v6 = vld [vmem:[#allocation5] sm:$0xff]  ;;  %v3525_v43 = vld [vmem:[%s3856_s7] sm:$0x3] }
 0x1b9   : > { %2797 = vrcp.f32 %v1071_v31  ;;  %v1218_v38 = vsub.f32 %v3440_v2, %v3448_v52  ;;  %vm1109_vm15 = vmor %vm1107_vm14, %vm1108_vm13  ;;  %v1128_v9 = vand.u32 2147483648, %v1071_v31  ;;  %v1126_v15 = vand.u32 2147483647, %v1071_v31 }
 0x1ba   : > { %v1104_v55 = vsub.f32 1.0, %v1103_v51  ;;  %1525 = vmatpush.msra.mxu3 %v1524_v16  ;;  %vm1122_vm3 = vweird.f32 %v1071_v31  ;;  %v3531_v50 = vperm.slane %v3525_v43, 0 }
 0x1bb   : > { %v1219_v60 = vand.u32 4294901760, %v1218_v38  ;;  %v1129_v19 = vor.u32 1.1754944e-38, %v1128_v9  ;;  %vm1127_vm5 = vcmp.eq.f32.partialorder %v1126_v15, 8.507059e+37 }
 0x1bc   : > { %v1105_v59 = vmul.f32 %v2796_v48, %v1104_v55  ;;  %1531 = vmatpush.msra.mxu3 %v1530_v56  ;;  %2304 = vmatpush.bf16.msrb.mxu2 %v2656_v6 }
 0x1bd   : > { %1220 = vmatmul.f32.gmra.mxu0 %v1219_v60  ;;  %1433 = vmatmul.f32.vlgmr.msrb.gmra.mxu1 %v3341_v18 }
 0x1be   : > { %v1106_v61 = vadd.f32 %v2796_v48, %v1105_v59  ;;  %1537 = vmatpush.msra.mxu3 %v1536_v63 }
 0x1bf   : > { %v2798_v22 = vpop.eup %2797  ;;  %1345 = vmatmul.f32.vlgmr.msrb.gmra.mxu3 %v3353_v29  ;;  %1482 = vmatmul.f32.gmra.mxu2 %v3395_v44 }
 0x1c0   : > { %v1118_v62 = vmul.f32 %v2798_v22, %v1071_v31  ;;  %1703 = vmatpush.msrb.mxu3 %v3355_v32  ;;  %v1110_v10 = vsel %vm1109_vm15, %v2796_v48, %v1106_v61  ;;  %vm1123_vm1 = vweird.f32 %v2798_v22 }
 0x1c1   : > { %v1115_v32 = vsel %vm1112_vm2, %v1114_v17, %v1110_v10  ;;  %vm1124_vm4 = vmor %vm1122_vm3, %vm1123_vm1 }
 0x1c2   : > { %v1119_v8 = vsub.f32 1.0, %v1118_v62  ;;  %1705 = vmatpush.msrb.mxu3 %v3361_v58 }
 0x1c4   : > { %v1120_v4 = vmul.f32 %v2798_v22, %v1119_v8  ;;  %1707 = vmatpush.msrb.mxu3 %v3372_v37  ;;  %v1134_v37 = vmul.f32 %v1115_v32, %v3397_v47  ;;  %v2665_v47 = vld [vmem:[%s3855_s6 + $0x38] sm:$0xff] }
 0x1c5   : > { %1396 = vmatmul.f32.vlgmr.msra.gmra.mxu0 %v3341_v18  ;;  %1437 = vmatmul.f32.gmra.mxu1 %v3364_v36 }
 0x1c6   : > { %v1121_v44 = vadd.f32 %v2798_v22, %v1120_v4  ;;  %1709 = vmatpush.msrb.mxu3 %v3384_v39  ;;  %2241 = vmatpush.bf16.msra.mxu0 %v2665_v47 }
 0x1c7   : > { %1351 = vmatmul.f32.gmra.mxu3 %v3388_v49  ;;  %1490 = vmatmul.f32.gmra.mxu2 %v3435_v42 }
 0x1c8   : > { %v1125_v58 = vsel %vm1124_vm4, %v2798_v22, %v1121_v44 }
 0x1c9   : > { %v1130_v20 = vsel %vm1127_vm5, %v1129_v19, %v1125_v58 }
 0x1ca   : > { %v1135_v25 = vmul.f32 %v1130_v20, %v3407_v11 }
 0x1cc   : > { %v1137_v26 = vpack.c.bf16 %v1135_v25, %v1134_v37 }
 0x1cd   : > { %1400 = vmatmul.f32.gmra.mxu0 %v3364_v36  ;;  %1441 = vmatmul.f32.gmra.mxu1 %v3405_v12 }
 0x1cf   : > { %1357 = vmatmul.f32.gmra.mxu3 %v3425_v24  ;;  %1498 = vmatmul.f32.gmra.mxu2 %v1219_v60 }
 0x1d5   : > { %1404 = vmatmul.f32.gmra.mxu0 %v3405_v12  ;;  %1445 = vmatmul.f32.gmra.mxu1 %v3433_v7 }
 0x1d7   : > { %1363 = vmatmul.f32.gmra.mxu3 %v3448_v52  ;;  %1674 = vmatmul.f32.vlgmr.msra.gmra.mxu2 %v3341_v18 }
 0x1dd   : > { %1408 = vmatmul.f32.gmra.mxu0 %v3433_v7  ;;  %1623 = vmatmul.f32.vlgmr.msra.gmra.mxu1 %v3353_v29 }
 0x1df   : > { %1539 = vmatmul.f32.vlgmr.msra.gmra.mxu3 %v3341_v18  ;;  %1678 = vmatmul.f32.gmra.mxu2 %v3364_v36 }
 0x1e0   : > { %2681 = vmatpush.bf16.msra.mxu3 %v2665_v47 }
 0x1e5   : > { %1581 = vmatmul.f32.vlgmr.msrb.gmra.mxu0 %v3347_v23  ;;  %1629 = vmatmul.f32.gmra.mxu1 %v3388_v49 }
 0x1e7   : > { %1543 = vmatmul.f32.gmra.mxu3 %v3364_v36  ;;  %1682 = vmatmul.f32.gmra.mxu2 %v3405_v12 }
 0x1ed   : > { %1586 = vmatmul.f32.gmra.mxu0 %v3377_v5  ;;  %1635 = vmatmul.f32.gmra.mxu1 %v3425_v24  ;;  %v2661_v24 = vld [vmem:[%s3855_s6 + $0x18] sm:$0xff] }
 0x1ef   : > { %1547 = vmatmul.f32.gmra.mxu3 %v3405_v12  ;;  %1686 = vmatmul.f32.gmra.mxu2 %v3433_v7 }
 0x1f5   : > { %1591 = vmatmul.f32.gmra.mxu0 %v3413_v27  ;;  %1641 = vmatmul.f32.gmra.mxu1 %v3448_v52  ;;  %v2663_v27 = vld [vmem:[%s3855_s6 + $0x28] sm:$0xff]  ;;  %v2658_v52 = vld [vmem:[%s3855_s6] sm:$0xff] }
 0x1f7   : > { %1551 = vmatmul.f32.gmra.mxu3 %v3433_v7  ;;  %2640 = vmatmul.msk.bf16.vlgmr.msrb.gmra.mxu2 %vm1158_vm0, %v1136_v14 }
 0x1fd   : > { %1596 = vmatmul.f32.gmra.mxu0 %v3440_v2 }
 0x1ff   : > { %1711 = vmatmul.f32.vlgmr.msrb.gmra.mxu3 %v3341_v18  ;;  %v2664_v18 = vld [vmem:[%s3855_s6 + $0x30] sm:$0xff] }
 0x200   : > { %2242 = vmatpush.bf16.msra.mxu0 %v2664_v18  ;;  %2682 = vmatpush.bf16.msra.mxu3 %v2664_v18 }
 0x204   : > { %2243 = vmatpush.bf16.msra.mxu0 %v2663_v27  ;;  %2683 = vmatpush.bf16.msra.mxu3 %v2663_v27 }
 0x207   : > { %1715 = vmatmul.f32.gmra.mxu3 %v3364_v36  ;;  %2641 = vmatmul.msk.bf16.gmra.mxu2 %vm1158_vm0, %v1137_v26 }
 0x208   : > { %2244 = vmatpush.bf16.msra.mxu0 %v2662_v33  ;;  %2684 = vmatpush.bf16.msra.mxu3 %v2662_v33 }
 0x20c   : > { %2245 = vmatpush.bf16.msra.mxu0 %v2661_v24  ;;  %2685 = vmatpush.bf16.msra.mxu3 %v2661_v24 }
 0x20f   : > { %1719 = vmatmul.f32.gmra.mxu3 %v3405_v12 }
 0x211   : > { %v1262_v23 = vpop.f32.mrf.mxu1 }
 0x217   : > { %1723 = vmatmul.f32.gmra.mxu3 %v3433_v7  ;;  %v2660_v7 = vld [vmem:[%s3855_s6 + $0x10] sm:$0xff] }
 0x218   : > { %2246 = vmatpush.bf16.msra.mxu0 %v2660_v7  ;;  %2686 = vmatpush.bf16.msra.mxu3 %v2660_v7 }
 0x219   : > { %v1197_v29 = vpop.f32.mrf.mxu0  ;;  %v1266_v5 = vpop.f32.mrf.mxu1 }
 0x21a   : > { %v1304_v39 = vpop.f32.mrf.mxu2  ;;  %v1263_v40 = vadd.f32 %v1262_v23, %v1197_v29 }
 0x21c   : > { %v1305_v21 = vadd.f32 %v1304_v39, %v1263_v40  ;;  %2247 = vmatpush.bf16.msra.mxu0 %v2659_v45  ;;  %2687 = vmatpush.bf16.msra.mxu3 %v2659_v45 }
 0x220   : > { %2248 = vmatpush.bf16.msra.mxu0 %v2658_v52  ;;  %2688 = vmatpush.bf16.msra.mxu3 %v2658_v52 }
 0x221   : > { %v1205_v49 = vpop.f32.mrf.mxu0 }
 0x222   : > { %v1309_v36 = vpop.f32.mrf.mxu2  ;;  %v1267_v16 = vadd.f32 %v1266_v5, %v1205_v49 }
 0x224   : > { %v1310_v51 = vadd.f32 %v1309_v36, %v1267_v16 }
 0x22a   : > { %v1270_v11 = vpop.f32.mrf.mxu1 }
 0x232   : > { %v1213_v12 = vpop.f32.mrf.mxu0  ;;  %v1274_v28 = vpop.f32.mrf.mxu1 }
 0x233   : > { %v1314_v14 = vpop.f32.mrf.mxu2  ;;  %v1271_v55 = vadd.f32 %v1270_v11, %v1213_v12 }
 0x235   : > { %v1315_v58 = vadd.f32 %v1314_v14, %v1271_v55 }
 0x23a   : > { %v3514_v34 = vpop.f32.mrf.mxu3  ;;  %v1221_v35 = vpop.f32.mrf.mxu0 }
 0x23b   : > { %v1434_v41 = vpop.f32.mrf.mxu1  ;;  %v3533_v48 = vpop.f32.mrf.mxu2  ;;  %v1275_v38 = vadd.f32 %v1274_v28, %v1221_v35 }
 0x23d   : > { %v1320_v20 = vadd.f32 %v3514_v34, %v1275_v38 }
 0x242   : > { %v1346_v42 = vpop.f32.mrf.mxu3  ;;  %v1397_v2 = vpop.f32.mrf.mxu0 }
 0x243   : > { %v1347_v13 = vadd.f32 %v1346_v42, %v1305_v21  ;;  %v1438_v54 = vpop.f32.mrf.mxu1  ;;  %v3559_v15 = vpop.f32.mrf.mxu2 }
 0x245   : > { %v1398_v46 = vadd.f32 %v1397_v2, %v1347_v13 }
 0x247   : > { %v1435_v31 = vadd.f32 %v1434_v41, %v1398_v46 }
 0x249   : > { %v3539_v53 = vsub.f32 %v1435_v31, %v3531_v50 }
 0x24a   : > { %v1352_v56 = vpop.f32.mrf.mxu3  ;;  %v1401_v59 = vpop.f32.mrf.mxu0 }
 0x24b   : > { %v1353_v57 = vadd.f32 %v1352_v56, %v1310_v51  ;;  %vm1741_vm0 = vcmp.ge.f32.partialorder %v3539_v53, 0.0  ;;  %vm1749_vm6 = vcmp.lt.f32.partialorder %v3539_v53, 1.0  ;;  %vm1781_vm7 = vcmp.ge.f32.partialorder %v3539_v53, 1.0  ;;  %v1442_v29 = vpop.f32.mrf.mxu1  ;;  %v3592_v2 = vpop.f32.mrf.mxu2 }
 0x24c   : > { %vm1757_vm8 = vmand %vm1741_vm0, %vm1749_vm6  ;;  %vm1789_vm9 = vcmp.lt.f32.partialorder %v3539_v53, 2.0  ;;  %vm1821_vm10 = vcmp.ge.f32.partialorder %v3539_v53, 2.0  ;;  %vm1829_vm11 = vcmp.lt.f32.partialorder %v3539_v53, 3.0  ;;  %vm1861_vm12 = vcmp.ge.f32.partialorder %v3539_v53, 3.0 }
 0x24d   : > { %v1402_v60 = vadd.f32 %v1401_v59, %v1353_v57  ;;  %v2520_v63 = vsel %vm1757_vm8, 1.0, %v2968_v0  ;;  %vm1797_vm13 = vmand %vm1781_vm7, %vm1789_vm9  ;;  %vm1869_vm14 = vcmp.lt.f32.partialorder %v3539_v53, 4.0  ;;  %v1909_v22 = vsub.f32 2.0, %v3539_v53 }
 0x24e   : > { %v2528_v61 = vsel %vm1797_vm13, 1.0, %v2968_v0  ;;  %vm1837_vm15 = vmand %vm1821_vm10, %vm1829_vm11  ;;  %v1901_v62 = vmul.f32 %v2520_v63, %v3539_v53  ;;  %v3554_v1 = vadd.f32 -1.0, %v3539_v53  ;;  %v1949_v3 = vsub.f32 3.0, %v3539_v53 }
 0x24f   : > { %v1439_v8 = vadd.f32 %v1438_v54, %v1402_v60  ;;  %v2536_v9 = vsel %vm1837_vm15, 1.0, %v2968_v0  ;;  %vm1877_vm1 = vmand %vm1861_vm12, %vm1869_vm14  ;;  %v1917_v10 = vmul.f32 %v2528_v61, %v1909_v22  ;;  %v2560_v4 = vadd.f32 -2.0, %v3539_v53 }
 0x250   : > { %v2544_v17 = vsel %vm1877_vm1, 1.0, %v2968_v0  ;;  %v1941_v44 = vmul.f32 %v3554_v1, %v2528_v61  ;;  %v1957_v32 = vmul.f32 %v2536_v9, %v1949_v3  ;;  %v3564_v19 = vsub.f32 4.0, %v3539_v53 }
 0x251   : > { %v3568_v37 = vsub.f32 %v1439_v8, %v3531_v50  ;;  %v1925_v26 = vadd.f32 %v1917_v10, %v1901_v62  ;;  %v1981_v6 = vmul.f32 %v2560_v4, %v2536_v9 }
 0x252   : > { %v1358_v25 = vpop.f32.mrf.mxu3  ;;  %v1965_v30 = vadd.f32 %v1957_v32, %v1941_v44  ;;  %v1997_v23 = vmul.f32 %v2544_v17, %v3564_v19  ;;  %v1405_v39 = vpop.f32.mrf.mxu0 }
 0x253   : > { %v1359_v5 = vadd.f32 %v1358_v25, %v1315_v58  ;;  %vm1743_vm2 = vcmp.ge.f32.partialorder %v3568_v37, 0.0  ;;  %vm1751_vm3 = vcmp.lt.f32.partialorder %v3568_v37, 1.0  ;;  %vm1783_vm4 = vcmp.ge.f32.partialorder %v3568_v37, 1.0  ;;  %v1446_v22 = vpop.f32.mrf.mxu1 }
 0x254   : > { %vm1759_vm5 = vmand %vm1743_vm2, %vm1751_vm3  ;;  %vm1791_vm0 = vcmp.lt.f32.partialorder %v3568_v37, 2.0  ;;  %vm1823_vm6 = vcmp.ge.f32.partialorder %v3568_v37, 2.0  ;;  %vm1831_vm7 = vcmp.lt.f32.partialorder %v3568_v37, 3.0  ;;  %vm1863_vm8 = vcmp.ge.f32.partialorder %v3568_v37, 3.0 }
 0x255   : > { %v1406_v49 = vadd.f32 %v1405_v39, %v1359_v5  ;;  %v2522_v47 = vsel %vm1759_vm5, 1.0, %v2968_v0  ;;  %vm1799_vm9 = vmand %vm1783_vm4, %vm1791_vm0  ;;  %vm1871_vm10 = vcmp.lt.f32.partialorder %v3568_v37, 4.0  ;;  %v1911_v11 = vsub.f32 2.0, %v3568_v37  ;;  %v2673_v5 = vld [vmem:[%s3855_s6 + $0x78] sm:$0xff] }
 0x256   : > { %v2530_v18 = vsel %vm1799_vm9, 1.0, %v2968_v0  ;;  %vm1839_vm11 = vmand %vm1823_vm6, %vm1831_vm7  ;;  %v1903_v36 = vmul.f32 %v2522_v47, %v3568_v37  ;;  %v2554_v12 = vadd.f32 -1.0, %v3568_v37  ;;  %v1951_v27 = vsub.f32 3.0, %v3568_v37  ;;  %2260 = vmatpush.bf16.msrb.mxu1 %v2673_v5 }
 0x257   : > { %v1443_v28 = vadd.f32 %v1442_v29, %v1406_v49  ;;  %v2538_v33 = vsel %vm1839_vm11, 1.0, %v2968_v0  ;;  %vm1879_vm12 = vmand %vm1863_vm8, %vm1871_vm10  ;;  %v1919_v34 = vmul.f32 %v2530_v18, %v1911_v11  ;;  %v2562_v35 = vadd.f32 -2.0, %v3568_v37 }
 0x258   : > { %v2546_v24 = vsel %vm1879_vm12, 1.0, %v2968_v0  ;;  %v1943_v14 = vmul.f32 %v2554_v12, %v2530_v18  ;;  %v1959_v40 = vmul.f32 %v2538_v33, %v1951_v27  ;;  %v1991_v41 = vsub.f32 4.0, %v3568_v37 }
 0x259   : > { %v3590_v21 = vsub.f32 %v1443_v28, %v3531_v50  ;;  %v1927_v7 = vadd.f32 %v1919_v34, %v1903_v36  ;;  %v1983_v42 = vmul.f32 %v2562_v35, %v2538_v33  ;;  %v2005_v13 = vadd.f32 %v1997_v23, %v1981_v6  ;;  %v3630_v23 = vpop.f32.mrf.mxu2 }
 0x25a   : > { %v1364_v45 = vpop.f32.mrf.mxu3  ;;  %v1967_v16 = vadd.f32 %v1959_v40, %v1943_v14  ;;  %v1999_v46 = vmul.f32 %v2546_v24, %v1991_v41  ;;  %v2013_v31 = vmul.f32 %v1925_v26, %v3539_v53  ;;  %v2021_v52 = vmul.f32 %v1965_v30, %v1949_v3  ;;  %v1409_v54 = vpop.f32.mrf.mxu0 }
 0x25b   : > { %v1365_v51 = vadd.f32 %v1364_v45, %v1320_v20  ;;  %v2015_v55 = vmul.f32 %v1927_v7, %v3568_v37  ;;  %v2045_v38 = vmul.f32 %v3554_v1, %v1965_v30  ;;  %v2053_v56 = vmul.f32 %v2005_v13, %v3564_v19  ;;  %v3648_v18 = vpop.f32.mrf.mxu1 }
 0x25c   : > { %v2007_v57 = vadd.f32 %v1999_v46, %v1983_v42  ;;  %v2023_v59 = vmul.f32 %v1967_v16, %v1951_v27  ;;  %v2029_v60 = vadd.f32 %v2021_v52, %v2013_v31  ;;  %v2047_v63 = vmul.f32 %v2554_v12, %v1967_v16  ;;  %v2672_v27 = vld [vmem:[%s3855_s6 + $0x70] sm:$0xff] }
 0x25d   : > { %v1410_v61 = vadd.f32 %v1409_v54, %v1365_v51  ;;  %v2061_v62 = vadd.f32 %v2053_v56, %v2045_v38  ;;  %vm1745_vm13 = vcmp.ge.f32.partialorder %v3590_v21, 0.0  ;;  %vm1753_vm14 = vcmp.lt.f32.partialorder %v3590_v21, 1.0  ;;  %2261 = vmatpush.bf16.msrb.mxu1 %v2672_v27 }
 0x25e   : > { %v2031_v8 = vadd.f32 %v2023_v59, %v2015_v55  ;;  %v2037_v9 = vmul.f32 0.5, %v2029_v60  ;;  %v2055_v3 = vmul.f32 %v2007_v57, %v1991_v41  ;;  %vm1785_vm15 = vcmp.ge.f32.partialorder %v3590_v21, 1.0  ;;  %vm3610_vm3 = vmand %vm1745_vm13, %vm1753_vm14 }
 0x25f   : > { %v1447_v10 = vadd.f32 %v1446_v22, %v1410_v61  ;;  %v2069_v4 = vmul.f32 0.5, %v2061_v62  ;;  %vm1793_vm1 = vcmp.lt.f32.partialorder %v3590_v21, 2.0  ;;  %vm1825_vm2 = vcmp.ge.f32.partialorder %v3590_v21, 2.0  ;;  %v2671_v61 = vld [vmem:[%s3855_s6 + $0x68] sm:$0xff] }
 0x260   : > { %v2039_v1 = vmul.f32 0.5, %v2031_v8  ;;  %v2063_v17 = vadd.f32 %v2055_v3, %v2047_v63  ;;  %v2077_v44 = vmul.f32 %v2037_v9, %v3539_v53  ;;  %vm1833_vm4 = vcmp.lt.f32.partialorder %v3590_v21, 3.0  ;;  %vm3618_vm5 = vmand %vm1785_vm15, %vm1793_vm1 }
 0x261   : > { %v3605_v32 = vsub.f32 %v1447_v10, %v3531_v50  ;;  %v2085_v58 = vmul.f32 %v2069_v4, %v3564_v19  ;;  %vm3626_vm7 = vmand %vm1825_vm2, %vm1833_vm4  ;;  %vm1865_vm14 = vcmp.ge.f32.partialorder %v3590_v21, 3.0  ;;  %vm1873_vm15 = vcmp.lt.f32.partialorder %v3590_v21, 4.0  ;;  %v1675_v62 = vpop.f32.mrf.mxu2  ;;  %2262 = vmatpush.bf16.msrb.mxu1 %v2671_v61 }
 0x262   : > { %v3615_v25 = vpop.f32.mrf.mxu3  ;;  %v2071_v26 = vmul.f32 0.5, %v2063_v17  ;;  %v2079_v53 = vmul.f32 %v2039_v1, %v3568_v37  ;;  %v3622_v50 = vpop.f32.mrf.mxu0  ;;  %v2524_v37 = vsel %vm3610_vm3, 1.0, %v2968_v0  ;;  %v2532_v11 = vsel %vm3618_vm5, 1.0, %v2968_v0  ;;  %vm1881_vm4 = vmand %vm1865_vm14, %vm1873_vm15 }
 0x263   : > { %v2093_v19 = vadd.f32 %v2085_v58, %v2077_v44  ;;  %vm1747_vm0 = vcmp.ge.f32.partialorder %v3605_v32, 0.0  ;;  %vm1755_vm6 = vcmp.lt.f32.partialorder %v3605_v32, 1.0  ;;  %vm1787_vm9 = vcmp.ge.f32.partialorder %v3605_v32, 1.0  ;;  %v2670_v44 = vld [vmem:[%s3855_s6 + $0x60] sm:$0xff]  ;;  %v1630_v30 = vpop.f32.mrf.mxu1 }
 0x264   : > { %v2087_v29 = vmul.f32 %v2071_v26, %v1991_v41  ;;  %vm1763_vm8 = vmand %vm1747_vm0, %vm1755_vm6  ;;  %vm1795_vm10 = vcmp.lt.f32.partialorder %v3605_v32, 2.0  ;;  %vm1827_vm11 = vcmp.ge.f32.partialorder %v3605_v32, 2.0  ;;  %vm1835_vm13 = vcmp.lt.f32.partialorder %v3605_v32, 3.0 }
 0x265   : > { %vm1803_vm12 = vmand %vm1787_vm9, %vm1795_vm10  ;;  %v2101_v49 = vmul.f32 0.33333334, %v2093_v19  ;;  %v2526_v47 = vsel %vm1763_vm8, 1.0, %v2968_v0  ;;  %v2540_v12 = vsel %vm3626_vm7, 1.0, %v2968_v0  ;;  %vm1867_vm2 = vcmp.ge.f32.partialorder %v3605_v32, 3.0  ;;  %2263 = vmatpush.bf16.msrb.mxu1 %v2670_v44 }
 0x266   : > { %v2095_v39 = vadd.f32 %v2087_v29, %v2079_v53  ;;  %vm1843_vm1 = vmand %vm1827_vm11, %vm1835_vm13  ;;  %v2534_v36 = vsel %vm1803_vm12, 1.0, %v2968_v0  ;;  %vm1875_vm3 = vcmp.lt.f32.partialorder %v3605_v32, 4.0  ;;  %v1905_v34 = vmul.f32 %v2524_v37, %v3590_v21 }
 0x267   : > { %v2542_v33 = vsel %vm1843_vm1, 1.0, %v2968_v0  ;;  %v1913_v35 = vsub.f32 2.0, %v3590_v21  ;;  %v1907_v24 = vmul.f32 %v2526_v47, %v3605_v32  ;;  %v1915_v14 = vsub.f32 2.0, %v3605_v32  ;;  %vm1883_vm5 = vmand %vm1867_vm2, %vm1875_vm3 }
 0x268   : > { %v2103_v28 = vmul.f32 0.33333334, %v2095_v39  ;;  %v2556_v40 = vadd.f32 -1.0, %v3590_v21  ;;  %v2558_v41 = vadd.f32 -1.0, %v3605_v32  ;;  %v1953_v45 = vsub.f32 3.0, %v3590_v21 }
 0x269   : > { %v1921_v13 = vmul.f32 %v2532_v11, %v1913_v35  ;;  %v1955_v16 = vsub.f32 3.0, %v3605_v32  ;;  %v2548_v46 = vsel %vm1881_vm4, 1.0, %v2968_v0  ;;  %v1923_v31 = vmul.f32 %v2534_v36, %v1915_v14 }
 0x26a   : > { %v2109_v7 = vpack.c.bf16 %v2103_v28, %v2101_v49  ;;  %v1544_v42 = vpop.f32.mrf.mxu3  ;;  %v1945_v52 = vmul.f32 %v2556_v40, %v2532_v11  ;;  %v1947_v51 = vmul.f32 %v2558_v41, %v2534_v36  ;;  %v1961_v55 = vmul.f32 %v2540_v12, %v1953_v45  ;;  %v1587_v57 = vpop.f32.mrf.mxu0 }
 0x26b   : > { %v1929_v54 = vadd.f32 %v1921_v13, %v1905_v34  ;;  %v1963_v38 = vmul.f32 %v2542_v33, %v1955_v16  ;;  %v2564_v56 = vadd.f32 -2.0, %v3590_v21  ;;  %v2550_v59 = vsel %vm1883_vm5, 1.0, %v2968_v0 }
 0x26c   : > { %2249 = vmatmul.bf16.vlgmr.msra.gmra.mxu0 %v2109_v7  ;;  %v1931_v60 = vadd.f32 %v1923_v31, %v1907_v24  ;;  %v2566_v63 = vadd.f32 -2.0, %v3605_v32  ;;  %v1993_v22 = vsub.f32 4.0, %v3590_v21  ;;  %v1969_v8 = vadd.f32 %v1961_v55, %v1945_v52  ;;  %v1636_v31 = vpop.f32.mrf.mxu1  ;;  %v2667_v55 = vld [vmem:[%s3855_s6 + $0x48] sm:$0xff] }
 0x26d   : > { %v1971_v9 = vadd.f32 %v1963_v38, %v1947_v51  ;;  %v1985_v3 = vmul.f32 %v2564_v56, %v2540_v12  ;;  %v1995_v10 = vsub.f32 4.0, %v3605_v32  ;;  %v2017_v17 = vmul.f32 %v1929_v54, %v3590_v21 }
 0x26e   : > { %v1987_v4 = vmul.f32 %v2566_v63, %v2542_v33  ;;  %v2001_v1 = vmul.f32 %v2548_v46, %v1993_v22  ;;  %v2019_v20 = vmul.f32 %v1931_v60, %v3605_v32  ;;  %v2025_v26 = vmul.f32 %v1969_v8, %v1953_v45  ;;  %v2669_v33 = vld [vmem:[%s3855_s6 + $0x58] sm:$0xff] }
 0x26f   : > { %v2003_v58 = vmul.f32 %v2550_v59, %v1995_v10  ;;  %v2027_v53 = vmul.f32 %v1971_v9, %v1955_v16  ;;  %v2049_v6 = vmul.f32 %v2556_v40, %v1969_v8  ;;  %v2051_v49 = vmul.f32 %v2558_v41, %v1971_v9  ;;  %2264 = vmatpush.bf16.msrb.mxu1 %v2669_v33  ;;  %v2668_v40 = vld [vmem:[%s3855_s6 + $0x50] sm:$0xff]  ;;  %v1679_v41 = vpop.f32.mrf.mxu2 }
 0x270   : > { %v2009_v19 = vadd.f32 %v2001_v1, %v1985_v3  ;;  %v2033_v5 = vadd.f32 %v2025_v26, %v2017_v17  ;;  %v1541_v27 = vadd.f32 %v3615_v25, %v3533_v48  ;;  %v1545_v25 = vadd.f32 %v1544_v42, %v3559_v15  ;;  %v2666_v42 = vld [vmem:[%s3855_s6 + $0x40] sm:$0xff] }
 0x271   : > { %v2011_v37 = vadd.f32 %v2003_v58, %v1987_v4  ;;  %v2035_v39 = vadd.f32 %v2027_v53, %v2019_v20 }
 0x272   : > { %v1548_v29 = vpop.f32.mrf.mxu3  ;;  %v2057_v47 = vmul.f32 %v2009_v19, %v1993_v22  ;;  %v2041_v11 = vmul.f32 0.5, %v2033_v5  ;;  %v1592_v35 = vpop.f32.mrf.mxu0  ;;  %v1583_v48 = vadd.f32 %v3622_v50, %v1541_v27  ;;  %v1588_v54 = vadd.f32 %v1587_v57, %v1545_v25 }
 0x273   : > { %v2043_v36 = vmul.f32 0.5, %v2035_v39  ;;  %v2059_v12 = vmul.f32 %v2011_v37, %v1995_v10  ;;  %2265 = vmatpush.bf16.msrb.mxu1 %v2668_v40 }
 0x274   : > { %v2065_v28 = vadd.f32 %v2057_v47, %v2049_v6  ;;  %v2081_v14 = vmul.f32 %v2041_v11, %v3590_v21  ;;  %v1625_v51 = vadd.f32 %v3648_v18, %v1583_v48  ;;  %v3710_v18 = vperm.slane %v3525_v43, 1 }
 0x275   : > { %v2067_v34 = vadd.f32 %v2059_v12, %v2051_v49  ;;  %v2083_v13 = vmul.f32 %v2043_v36, %v3605_v32  ;;  %v1549_v32 = vadd.f32 %v1548_v29, %v3592_v2  ;;  %v1631_v57 = vadd.f32 %v1630_v30, %v1588_v54 }
 0x276   : > { %v2073_v24 = vmul.f32 0.5, %v2065_v28  ;;  %v1676_v60 = vadd.f32 %v1675_v62, %v1625_v51 }
 0x277   : > { %v2075_v7 = vmul.f32 0.5, %v2067_v34  ;;  %2266 = vmatpush.bf16.msrb.mxu1 %v2667_v55  ;;  %v1683_v63 = vpop.f32.mrf.mxu2  ;;  %v1680_v4 = vadd.f32 %v1679_v41, %v1631_v57 }
 0x278   : > { %v2089_v45 = vmul.f32 %v2073_v24, %v1993_v22  ;;  %v1593_v22 = vadd.f32 %v1592_v35, %v1549_v32 }
 0x279   : > { %v2091_v16 = vmul.f32 %v2075_v7, %v1995_v10 }
 0x27a   : > { %v1552_v46 = vpop.f32.mrf.mxu3  ;;  %v2097_v52 = vadd.f32 %v2089_v45, %v2081_v14  ;;  %v1597_v59 = vpop.f32.mrf.mxu0  ;;  %v1637_v3 = vadd.f32 %v1636_v31, %v1593_v22 }
 0x27b   : > { %v2099_v21 = vadd.f32 %v2091_v16, %v2083_v13  ;;  %v1553_v15 = vadd.f32 %v1552_v46, %v3630_v23  ;;  %2267 = vmatpush.bf16.msrb.mxu1 %v2666_v42  ;;  %v1642_v23 = vpop.f32.mrf.mxu1 }
 0x27c   : > { %v2105_v38 = vmul.f32 0.33333334, %v2097_v52  ;;  %v1684_v47 = vadd.f32 %v1683_v63, %v1637_v3 }
 0x27d   : > { %v2107_v50 = vmul.f32 0.33333334, %v2099_v21  ;;  %v1598_v2 = vadd.f32 %v1597_v59, %v1553_v15 }
 0x27f   : > { %v2111_v56 = vpack.c.bf16 %v2107_v50, %v2105_v38  ;;  %v1643_v10 = vadd.f32 %v1642_v23, %v1598_v2  ;;  %v1687_v37 = vpop.f32.mrf.mxu2 }
 0x281   : > { %2254 = vmatmul.bf16.vlgmr.msra.gmra.mxu3 %v2111_v56  ;;  %v1688_v11 = vadd.f32 %v1687_v37, %v1643_v10 }
 0x282   : > { %v1712_v61 = vpop.f32.mrf.mxu3 }
 0x283   : > { %v1713_v8 = vadd.f32 %v1712_v61, %v1676_v60 }
 0x285   : > { %v3713_v9 = vsub.f32 %v1713_v8, %v3710_v18 }
 0x287   : > { %vm1742_vm0 = vcmp.ge.f32.partialorder %v3713_v9, 0.0  ;;  %vm1750_vm6 = vcmp.lt.f32.partialorder %v3713_v9, 1.0  ;;  %vm1782_vm7 = vcmp.ge.f32.partialorder %v3713_v9, 1.0  ;;  %vm1790_vm8 = vcmp.lt.f32.partialorder %v3713_v9, 2.0 }
 0x288   : > { %vm1758_vm9 = vmand %vm1742_vm0, %vm1750_vm6  ;;  %vm1822_vm10 = vcmp.ge.f32.partialorder %v3713_v9, 2.0  ;;  %vm1830_vm11 = vcmp.lt.f32.partialorder %v3713_v9, 3.0  ;;  %vm1862_vm12 = vcmp.ge.f32.partialorder %v3713_v9, 3.0  ;;  %vm1870_vm13 = vcmp.lt.f32.partialorder %v3713_v9, 4.0 }
 0x289   : > { %v2521_v43 = vsel %vm1758_vm9, 1.0, %v2968_v0  ;;  %vm1798_vm14 = vmand %vm1782_vm7, %vm1790_vm8  ;;  %v1910_v62 = vsub.f32 2.0, %v3713_v9  ;;  %v2553_v1 = vadd.f32 -1.0, %v3713_v9  ;;  %v1950_v17 = vsub.f32 3.0, %v3713_v9 }
 0x28a   : > { %v1716_v44 = vpop.f32.mrf.mxu3  ;;  %v2529_v58 = vsel %vm1798_vm14, 1.0, %v2968_v0  ;;  %vm1838_vm15 = vmand %vm1822_vm10, %vm1830_vm11  ;;  %v1902_v20 = vmul.f32 %v2521_v43, %v3713_v9  ;;  %v2561_v26 = vadd.f32 -2.0, %v3713_v9  ;;  %v3731_v53 = vsub.f32 4.0, %v3713_v9 }
 0x28b   : > { %v1717_v30 = vadd.f32 %v1716_v44, %v1680_v4  ;;  %v2537_v19 = vsel %vm1838_vm15, 1.0, %v2968_v0  ;;  %vm1878_vm1 = vmand %vm1862_vm12, %vm1870_vm13  ;;  %v1918_v6 = vmul.f32 %v2529_v58, %v1910_v62  ;;  %v1942_v29 = vmul.f32 %v2553_v1, %v2529_v58 }
 0x28c   : > { %v2545_v5 = vsel %vm1878_vm1, 1.0, %v2968_v0  ;;  %v1958_v39 = vmul.f32 %v2537_v19, %v1950_v17  ;;  %v1982_v27 = vmul.f32 %v2561_v26, %v2537_v19 }
 0x28d   : > { %v3738_v49 = vsub.f32 %v1717_v30, %v3710_v18  ;;  %v1926_v36 = vadd.f32 %v1918_v6, %v1902_v20  ;;  %v1998_v28 = vmul.f32 %v2545_v5, %v3731_v53 }
 0x28e   : > { %v1966_v12 = vadd.f32 %v1958_v39, %v1942_v29 }
 0x28f   : > { %vm1744_vm2 = vcmp.ge.f32.partialorder %v3738_v49, 0.0  ;;  %vm1752_vm3 = vcmp.lt.f32.partialorder %v3738_v49, 1.0  ;;  %vm1784_vm4 = vcmp.ge.f32.partialorder %v3738_v49, 1.0  ;;  %vm1792_vm5 = vcmp.lt.f32.partialorder %v3738_v49, 2.0 }
 0x290   : > { %vm1760_vm0 = vmand %vm1744_vm2, %vm1752_vm3  ;;  %vm1824_vm6 = vcmp.ge.f32.partialorder %v3738_v49, 2.0  ;;  %vm1832_vm7 = vcmp.lt.f32.partialorder %v3738_v49, 3.0  ;;  %vm1864_vm8 = vcmp.ge.f32.partialorder %v3738_v49, 3.0  ;;  %vm1872_vm9 = vcmp.lt.f32.partialorder %v3738_v49, 4.0 }
 0x291   : > { %v2523_v33 = vsel %vm1760_vm0, 1.0, %v2968_v0  ;;  %vm1800_vm10 = vmand %vm1784_vm4, %vm1792_vm5  ;;  %v1912_v34 = vsub.f32 2.0, %v3738_v49  ;;  %v2555_v35 = vadd.f32 -1.0, %v3738_v49  ;;  %v1952_v24 = vsub.f32 3.0, %v3738_v49 }
 0x292   : > { %v1720_v14 = vpop.f32.mrf.mxu3  ;;  %v2531_v40 = vsel %vm1800_vm10, 1.0, %v2968_v0  ;;  %vm1840_vm11 = vmand %vm1824_vm6, %vm1832_vm7  ;;  %v1904_v41 = vmul.f32 %v2523_v33, %v3738_v49  ;;  %v2563_v7 = vadd.f32 -2.0, %v3738_v49  ;;  %v1992_v13 = vsub.f32 4.0, %v3738_v49 }
 0x293   : > { %v1721_v48 = vadd.f32 %v1720_v14, %v1684_v47  ;;  %v2539_v25 = vsel %vm1840_vm11, 1.0, %v2968_v0  ;;  %vm1880_vm12 = vmand %vm1864_vm8, %vm1872_vm9  ;;  %v1920_v45 = vmul.f32 %v2531_v40, %v1912_v34  ;;  %v1944_v16 = vmul.f32 %v2555_v35, %v2531_v40 }
 0x294   : > { %v2547_v46 = vsel %vm1880_vm12, 1.0, %v2968_v0  ;;  %v1960_v31 = vmul.f32 %v2539_v25, %v1952_v24  ;;  %v1984_v52 = vmul.f32 %v2563_v7, %v2539_v25  ;;  %v2006_v21 = vadd.f32 %v1998_v28, %v1982_v27 }
 0x295   : > { %v3762_v51 = vsub.f32 %v1721_v48, %v3710_v18  ;;  %v1928_v54 = vadd.f32 %v1920_v45, %v1904_v41  ;;  %v2000_v55 = vmul.f32 %v2547_v46, %v1992_v13  ;;  %v2014_v32 = vmul.f32 %v1926_v36, %v3713_v9 }
 0x296   : > { %v1968_v38 = vadd.f32 %v1960_v31, %v1944_v16  ;;  %v2022_v50 = vmul.f32 %v1966_v12, %v1950_v17  ;;  %v2046_v15 = vmul.f32 %v2553_v1, %v1966_v12  ;;  %v2054_v42 = vmul.f32 %v2006_v21, %v3731_v53 }
 0x297   : > { %v2008_v56 = vadd.f32 %v2000_v55, %v1984_v52  ;;  %v2016_v59 = vmul.f32 %v1928_v54, %v3738_v49  ;;  %vm1746_vm13 = vcmp.ge.f32.partialorder %v3762_v51, 0.0  ;;  %vm1754_vm14 = vcmp.lt.f32.partialorder %v3762_v51, 1.0 }
 0x298   : > { %v2024_v60 = vmul.f32 %v1968_v38, %v1952_v24  ;;  %v2030_v57 = vadd.f32 %v2022_v50, %v2014_v32  ;;  %v2048_v63 = vmul.f32 %v2555_v35, %v1968_v38  ;;  %v2062_v22 = vadd.f32 %v2054_v42, %v2046_v15  ;;  %vm1762_vm15 = vmand %vm1746_vm13, %vm1754_vm14 }
 0x299   : > { %v2056_v2 = vmul.f32 %v2008_v56, %v1992_v13  ;;  %v2525_v61 = vsel %vm1762_vm15, 1.0, %v2968_v0  ;;  %vm1786_vm1 = vcmp.ge.f32.partialorder %v3762_v51, 1.0  ;;  %vm1794_vm2 = vcmp.lt.f32.partialorder %v3762_v51, 2.0 }
 0x29a   : > { %v1724_v8 = vpop.f32.mrf.mxu3  ;;  %v2032_v23 = vadd.f32 %v2024_v60, %v2016_v59  ;;  %v2038_v3 = vmul.f32 0.5, %v2030_v57  ;;  %v2070_v10 = vmul.f32 0.5, %v2062_v22  ;;  %vm1802_vm3 = vmand %vm1786_vm1, %vm1794_vm2  ;;  %vm1826_vm4 = vcmp.ge.f32.partialorder %v3762_v51, 2.0 }
 0x29b   : > { %v1725_v4 = vadd.f32 %v1724_v8, %v1688_v11  ;;  %v2064_v43 = vadd.f32 %v2056_v2, %v2048_v63  ;;  %v2533_v62 = vsel %vm1802_vm3, 1.0, %v2968_v0  ;;  %vm1834_vm5 = vcmp.lt.f32.partialorder %v3762_v51, 3.0 }
 0x29c   : > { %v2040_v1 = vmul.f32 0.5, %v2032_v23  ;;  %v2078_v17 = vmul.f32 %v2038_v3, %v3713_v9  ;;  %v2086_v44 = vmul.f32 %v2070_v10, %v3731_v53  ;;  %vm1842_vm0 = vmand %vm1826_vm4, %vm1834_vm5  ;;  %vm1866_vm6 = vcmp.ge.f32.partialorder %v3762_v51, 3.0 }
 0x29d   : > { %v3779_v58 = vsub.f32 %v1725_v4, %v3710_v18  ;;  %v2072_v20 = vmul.f32 0.5, %v2064_v43  ;;  %v2541_v26 = vsel %vm1842_vm0, 1.0, %v2968_v0  ;;  %vm1874_vm7 = vcmp.lt.f32.partialorder %v3762_v51, 4.0 }
 0x29e   : > { %v2080_v30 = vmul.f32 %v2040_v1, %v3738_v49  ;;  %v2094_v19 = vadd.f32 %v2086_v44, %v2078_v17  ;;  %v1906_v6 = vmul.f32 %v2525_v61, %v3762_v51  ;;  %v1914_v9 = vsub.f32 2.0, %v3762_v51  ;;  %vm1882_vm11 = vmand %vm1866_vm6, %vm1874_vm7 }
 0x29f   : > { %v2088_v29 = vmul.f32 %v2072_v20, %v1992_v13  ;;  %vm1748_vm8 = vcmp.ge.f32.partialorder %v3779_v58, 0.0  ;;  %vm1756_vm9 = vcmp.lt.f32.partialorder %v3779_v58, 1.0  ;;  %vm1788_vm10 = vcmp.ge.f32.partialorder %v3779_v58, 1.0 }
 0x2a0   : > { %v2102_v18 = vmul.f32 0.33333334, %v2094_v19  ;;  %vm1764_vm12 = vmand %vm1748_vm8, %vm1756_vm9  ;;  %vm1796_vm13 = vcmp.lt.f32.partialorder %v3779_v58, 2.0  ;;  %vm1828_vm14 = vcmp.ge.f32.partialorder %v3779_v58, 2.0  ;;  %vm1836_vm15 = vcmp.lt.f32.partialorder %v3779_v58, 3.0 }
 0x2a1   : > { %v2096_v53 = vadd.f32 %v2088_v29, %v2080_v30  ;;  %v2527_v37 = vsel %vm1764_vm12, 1.0, %v2968_v0  ;;  %vm1804_vm1 = vmand %vm1788_vm10, %vm1796_vm13  ;;  %vm1868_vm2 = vcmp.ge.f32.partialorder %v3779_v58, 3.0  ;;  %vm1876_vm3 = vcmp.lt.f32.partialorder %v3779_v58, 4.0  ;;  %v2306_v29 = vpop.f32.mrf.mxu2 }
 0x2a2   : > { %v2535_v5 = vsel %vm1804_vm1, 1.0, %v2968_v0  ;;  %vm1844_vm4 = vmand %vm1828_vm14, %vm1836_vm15  ;;  %v2549_v39 = vsel %vm1882_vm11, 1.0, %v2968_v0  ;;  %v1908_v49 = vmul.f32 %v2527_v37, %v3779_v58  ;;  %v1916_v47 = vsub.f32 2.0, %v3779_v58 }
 0x2a3   : > { %v2104_v11 = vmul.f32 0.33333334, %v2096_v53  ;;  %v2543_v36 = vsel %vm1844_vm4, 1.0, %v2968_v0  ;;  %vm1884_vm5 = vmand %vm1868_vm2, %vm1876_vm3  ;;  %v1922_v12 = vmul.f32 %v2533_v62, %v1914_v9  ;;  %v2557_v27 = vadd.f32 -1.0, %v3762_v51 }
 0x2a4   : > { %v2551_v28 = vsel %vm1884_vm5, 1.0, %v2968_v0  ;;  %v1924_v33 = vmul.f32 %v2535_v5, %v1916_v47  ;;  %v2559_v34 = vadd.f32 -1.0, %v3779_v58  ;;  %v1954_v35 = vsub.f32 3.0, %v3762_v51 }
 0x2a5   : > { %v2110_v24 = vpack.c.bf16 %v2104_v11, %v2102_v18  ;;  %v1930_v14 = vadd.f32 %v1922_v12, %v1906_v6  ;;  %v1946_v40 = vmul.f32 %v2557_v27, %v2533_v62  ;;  %v1956_v41 = vsub.f32 3.0, %v3779_v58 }
 0x2a6   : > { %v1932_v7 = vadd.f32 %v1924_v33, %v1908_v49  ;;  %v1948_v13 = vmul.f32 %v2559_v34, %v2535_v5  ;;  %v1962_v48 = vmul.f32 %v2541_v26, %v1954_v35  ;;  %v2565_v25 = vadd.f32 -2.0, %v3762_v51 }
 0x2a7   : > { %2268 = vmatmul.bf16.vlgmr.msrb.gmra.mxu1 %v2110_v24  ;;  %v1964_v45 = vmul.f32 %v2543_v36, %v1956_v41  ;;  %v2567_v16 = vadd.f32 -2.0, %v3779_v58  ;;  %v1994_v0 = vsub.f32 4.0, %v3762_v51  ;;  %v1996_v46 = vsub.f32 4.0, %v3779_v58 }
 0x2a8   : > { %v1970_v31 = vadd.f32 %v1962_v48, %v1946_v40  ;;  %v1986_v52 = vmul.f32 %v2565_v25, %v2541_v26  ;;  %v2018_v21 = vmul.f32 %v1930_v14, %v3762_v51  ;;  %v2020_v54 = vmul.f32 %v1932_v7, %v3779_v58 }
 0x2a9   : > { %v1972_v55 = vadd.f32 %v1964_v45, %v1948_v13  ;;  %v1988_v32 = vmul.f32 %v2567_v16, %v2543_v36  ;;  %v2002_v38 = vmul.f32 %v2549_v39, %v1994_v0  ;;  %v2004_v50 = vmul.f32 %v2551_v28, %v1996_v46  ;;  %v2308_v39 = vpop.f32.mrf.mxu2 }
 0x2aa   : > { %v2026_v15 = vmul.f32 %v1970_v31, %v1954_v35  ;;  %v2050_v42 = vmul.f32 %v2557_v27, %v1970_v31 }
 0x2ab   : > { %v2010_v56 = vadd.f32 %v2002_v38, %v1986_v52  ;;  %v2012_v59 = vadd.f32 %v2004_v50, %v1988_v32  ;;  %v2028_v60 = vmul.f32 %v1972_v55, %v1956_v41  ;;  %v2052_v57 = vmul.f32 %v2559_v34, %v1972_v55 }
 0x2ac   : > { %v2034_v63 = vadd.f32 %v2026_v15, %v2018_v21 }
 0x2ad   : > { %v2036_v22 = vadd.f32 %v2028_v60, %v2020_v54  ;;  %v2058_v2 = vmul.f32 %v2010_v56, %v1994_v0  ;;  %v2060_v61 = vmul.f32 %v2012_v59, %v1996_v46 }
 0x2ae   : > { %v2042_v8 = vmul.f32 0.5, %v2034_v63 }
 0x2af   : > { %v2044_v23 = vmul.f32 0.5, %v2036_v22  ;;  %v2066_v3 = vadd.f32 %v2058_v2, %v2050_v42  ;;  %v2068_v10 = vadd.f32 %v2060_v61, %v2052_v57 }
 0x2b0   : > { %v2082_v62 = vmul.f32 %v2042_v8, %v3762_v51 }
 0x2b1   : > { %v2074_v4 = vmul.f32 0.5, %v2066_v3  ;;  %v2076_v43 = vmul.f32 0.5, %v2068_v10  ;;  %v2084_v1 = vmul.f32 %v2044_v23, %v3779_v58  ;;  %v2311_v11 = vpop.f32.mrf.mxu2 }
 0x2b3   : > { %v2090_v17 = vmul.f32 %v2074_v4, %v1994_v0  ;;  %v2092_v44 = vmul.f32 %v2076_v43, %v1996_v46 }
 0x2b5   : > { %v2098_v20 = vadd.f32 %v2090_v17, %v2082_v62  ;;  %v2100_v26 = vadd.f32 %v2092_v44, %v2084_v1 }
 0x2b7   : > { %v2106_v30 = vmul.f32 0.33333334, %v2098_v20  ;;  %v2108_v19 = vmul.f32 0.33333334, %v2100_v26 }
 0x2b9   : > { %v2112_v6 = vpack.c.bf16 %v2108_v19, %v2106_v30  ;;  %v2313_v35 = vpop.f32.mrf.mxu2 }
 0x2bb   : > { %2273 = vmatmul.bf16.gmra.mxu1 %v2112_v6 }
 0x2e9   : > { %v2250_v9 = vpop.f32.mrf.mxu0 }
 0x2f1   : > { %v2252_v51 = vpop.f32.mrf.mxu0 }
 0x304   : > { %v2255_v47 = vpop.f32.mrf.mxu3 }
 0x30c   : > { %v2257_v28 = vpop.f32.mrf.mxu3 }
 0x324   : > { %v2269_v18 = vpop.f32.mrf.mxu1 }
 0x325   : > { %v2270_v53 = vadd.f32 %v2269_v18, %v2250_v9 }
 0x327   : > { %v2307_v37 = vadd.f32 %v2306_v29, %v2270_v53 }
 0x329   : > { %2316 = vst [vmem:[%s376_s29] sm:$0xff] %v2307_v37 }
 0x32c   : > { %v2271_v58 = vpop.f32.mrf.mxu1 }
 0x32d   : > { %v2272_v5 = vadd.f32 %v2271_v58, %v2252_v51 }
 0x32f   : > { %v2309_v49 = vadd.f32 %v2308_v39, %v2272_v5 }
 0x331   : > { %2317 = vst [vmem:[%s376_s29 + $0x8] sm:$0xff] %v2309_v49 }
 0x338   : > { %v2274_v36 = vpop.f32.mrf.mxu1 }
 0x339   : > { %v2275_v12 = vadd.f32 %v2274_v36, %v2255_v47 }
 0x33b   : > { %v2312_v27 = vadd.f32 %v2311_v11, %v2275_v12 }
 0x33d   : > { %2318 = vst [vmem:[%s376_s29 + $0x10] sm:$0xff] %v2312_v27 }
 0x340   : > { %v2276_v33 = vpop.f32.mrf.mxu1 }
 0x341   : > { %v2277_v34 = vadd.f32 %v2276_v33, %v2257_v28 }
 0x343   : > { %v2314_v24 = vadd.f32 %v2313_v35, %v2277_v34 }
 0x345   : > { %2319 = vst [vmem:[%s376_s29 + $0x18] sm:$0xff] %v2314_v24 }
 0x346   : > { %2916 = shalt.err (!%p2913_p8)
}
 0x347   : > { %s2969_s25 = smov 128   ;;  %s2970_s26 = smov 8  }
 0x348   : > { %2701 = dma.vmem_to_hbm [thread:$0]  (%p3059_p5), %s2334_s21, 512, %s2336_s24, %s2321_s27, %s2969_s25, %s2969_s25, %s2970_s26  }
 0x349 PF: > { %p2723_p9 = scmp.ge.s32.totalorder %s2959_s12, 2  ;;  %s2350_s29 = sand.u32 1, %s2947_s30  }
 0x34a   : > { %s2351_s5 = scalar_lea.sflag [#allocation4], %s2350_s29 }
 0x34b   : > { %p2714_p10 = pnand %p2723_p9, %p3063_p6 }
 0x34d   : > { %p2715_p11 = pneg %p2714_p10 }
 0x34f   : > { %2942 = dma.done.wait (%p2715_p11), %s2351_s5, 512  }
 0x350   : > { %2944 = vsyncadd (%p2715_p11), %s2351_s5, 4294966784  ;;  %s3880_s1 = sld [smem:[#allocation12_spill]]  ;;  %p21_p12 = scmp.ge.s32.totalorder %s3046_s15, 4  }
 0x351   : > { %s3881_s11 = sld [smem:[#allocation13_spill]]  ;;  %s3882_s30 = smov %s2951_s10 }
 0x352   : > { %s3884_s12 = smov %s3046_s15  ;;  %23 = sbr.rel (!%p21_p12) target bundleno = 8 (0x8), region = 104 }
 0x356   : > { %s3883_s10 = smov %s3880_s1 }
 0x357   :  { %2357 = vsyncpa [#allocation3], 1 }
 0x358   :  { %2359 = vsyncpa [#allocation3 + $0x1], 1 }
 0x359   :  { %2360 = vsyncpa [#allocation6], 1 }
 0x35a   :  { %2361 = vsyncpa [#allocation4], 1 }
 0x35b   :  { %2363 = vsyncpa [#allocation4 + $0x1], 1 }

</bundles_post_ra>
